<compile_context>
chip_gen: v5e
topology: v5e:2x2
jax: 0.10.0
libtpu: 0.0.40
codegen_flags: <defaults>
</compile_context>

<pallas_src>
import functools
import math

import jax
import jax.numpy as jnp
from jax.experimental import pallas as pl
from jax.experimental.pallas import tpu as pltpu


CFG = dict(
    batch=2, in_ch=3, img=16, patch=4,
    latent_dim=32, codebook=64,            # num_codebook_vectors = 64 -> mask_token_id = 64
    n_layers=2, n_heads=4, mlp_dim=64,
    choice_temperature=4.5,
)
CFG["tokens_per_side"] = CFG["img"] // CFG["patch"]
CFG["num_image_tokens"] = CFG["tokens_per_side"] ** 2
CFG["vocab"] = CFG["codebook"] + 1         # codebook entries + mask token
CFG["vocab_pad"] = 128                     # lane-dense logits store


# ------------------------------- fused kernel --------------------------------

def _maskgit_kernel(
    # per-batch inputs
    patches_ref, mask_ref,
    # encoder / embeddings
    conv_w_ref, codebook_ref, tok_emb_ref, pos_ref,
    # stacked transformer weights (leading dim = layer), bf16
    wqkv_ref, wo_ref, w1_ref, w2_ref, head_w_ref,
    # packed small vectors
    layer_vecs_ref, misc_ref,
    # outputs
    logits_ref, zidx_ref,
    *, seq, n_layers, n_heads, mask_token_id, codebook_size, eps,
):
    d_model = conv_w_ref.shape[1]
    d_head = d_model // n_heads
    mlp_dim = w1_ref.shape[2]
    vpad = logits_ref.shape[1]

    def mm(a_f32, w_bf16):
        # bf16 MXU inputs, f32 accumulation (weights already bf16 at the boundary)
        return jnp.dot(a_f32.astype(jnp.bfloat16), w_bf16,
                       preferred_element_type=jnp.float32)

    def layer_norm(x, g, b):
        mu = jnp.mean(x, axis=-1, keepdims=True)
        var = jnp.mean((x - mu) * (x - mu), axis=-1, keepdims=True)
        return (x - mu) * jax.lax.rsqrt(var + eps) * g + b

    def gelu(x):
        # TODO(synk): tanh-approx GELU; PyTorch nn.GELU() default is exact erf (~1e-3 diff).
        c = 0.7978845608028654  # sqrt(2/pi)
        return 0.5 * x * (1.0 + jnp.tanh(c * (x + 0.044715 * x * x * x)))

    # ---- packed misc vectors: [conv_b, lnf_g, lnf_b, head_b]
    mv = misc_ref[...]
    conv_b = mv[0:1, :d_model]
    lnf_g = mv[1:2, :d_model]
    lnf_b = mv[2:3, :d_model]
    head_b = mv[3:4, :vpad]

    # ---- VQGAN encoder analogue: patch-embed + nearest-codebook (f32 for argmin fidelity)
    patches = patches_ref[...].astype(jnp.float32)                       # (T, C*p*p)
    z = jnp.dot(patches, conv_w_ref[...],
                preferred_element_type=jnp.float32) + conv_b              # (T, D)
    cb = codebook_ref[...]                                               # (K, D) f32
    z2 = jnp.sum(z * z, axis=-1, keepdims=True)                          # (T, 1)
    c2 = jnp.sum(cb * cb, axis=-1, keepdims=True).T                      # (1, K)
    dist = z2 - 2.0 * jnp.dot(z, cb.T, preferred_element_type=jnp.float32) + c2
    min_d = jnp.min(dist, axis=-1, keepdims=True)
    iota_k = jax.lax.broadcasted_iota(jnp.int32, dist.shape, 1)
    z_idx = jnp.min(jnp.where(dist <= min_d, iota_k, codebook_size),
                    axis=-1, keepdims=True)
    z_idx = jnp.minimum(z_idx, codebook_size - 1).astype(jnp.int32)      # NaN-tie guard
    zidx_ref[...] = z_idx

    # ---- apply random mask, token embedding via one-hot matmul (vocab padded to 128)
    mask = mask_ref[...]                                                 # (T, 1) int32
    a_idx = jnp.where(mask > 0, jnp.int32(mask_token_id), z_idx)         # (T, 1)
    iota_v = jax.lax.broadcasted_iota(jnp.int32, (seq, vpad), 1)
    onehot = (iota_v == a_idx).astype(jnp.bfloat16)                      # (T, Vpad)
    h = jnp.dot(onehot, tok_emb_ref[...],
                preferred_element_type=jnp.float32) + pos_ref[...]       # (T, D) f32

    # ---- transformer blocks (pre-LN MHA + MLP), statically unrolled over layers
    for l in range(n_layers):
        lv = layer_vecs_ref[l]                                           # (8, 128)
        ln1_g = lv[0:1, :d_model]
        ln1_b = lv[1:2, :d_model]
        bqkv = lv[2:3, :3 * d_model]
        bo = lv[3:4, :d_model]
        ln2_g = lv[4:5, :d_model]
        ln2_b = lv[5:6, :d_model]
        b1 = lv[6:7, :mlp_dim]
        b2 = lv[7:8, :d_model]

        x1 = layer_norm(h, ln1_g, ln1_b)
        # fused QKV projection; 1/sqrt(d_head) already folded into W_Q/b_Q at init.
        qkv = (mm(x1, wqkv_ref[l]) + bqkv).astype(jnp.bfloat16)          # (T, 3D) one cast
        wo_l = wo_ref[l]                                                 # (D, D) bf16

        o_acc = jnp.zeros((seq, d_model), jnp.float32)
        for hh in range(n_heads):
            c0 = hh * d_head
            qh = qkv[:, c0:c0 + d_head]
            kh = qkv[:, d_model + c0:d_model + c0 + d_head]
            vh = qkv[:, 2 * d_model + c0:2 * d_model + c0 + d_head]
            # q @ k^T via dot_general (no explicit transpose), f32 accumulate
            s = jax.lax.dot_general(qh, kh, (((1,), (1,)), ((), ())),
                                    preferred_element_type=jnp.float32)
            s = s - jnp.max(s, axis=-1, keepdims=True)
            p = jnp.exp(s)
            p = p * pl.reciprocal(jnp.sum(p, axis=-1, keepdims=True), approx=True)
            ctx = jnp.dot(p.astype(jnp.bfloat16), vh,
                          preferred_element_type=jnp.float32)            # (T, d_head)
            # fold W_O into the head loop: no concatenate, accumulate into (T, D)
            o_acc = o_acc + jnp.dot(ctx.astype(jnp.bfloat16),
                                    wo_l[c0:c0 + d_head, :],
                                    preferred_element_type=jnp.float32)
        h = h + o_acc + bo                                               # fused residual

        x2 = layer_norm(h, ln2_g, ln2_b)
        m = gelu(mm(x2, w1_ref[l]) + b1)
        h = h + mm(m, w2_ref[l]) + b2                                    # fused residual

    hf = layer_norm(h, lnf_g, lnf_b)
    logits_ref[...] = (mm(hf, head_w_ref[...]) + head_b).astype(logits_ref.dtype)


# ------------------------------ parameter init --------------------------------

def init_params(key):
    c = CFG
    D, V, Vp = c["latent_dim"], c["vocab"], c["vocab_pad"]
    T, L, M = c["num_image_tokens"], c["n_layers"], c["mlp_dim"]
    K = c["codebook"]
    Cp2 = c["in_ch"] * c["patch"] * c["patch"]
    d_head = D // c["n_heads"]
    scale = 1.0 / math.sqrt(d_head)

    ks = iter(jax.random.split(key, 64))
    nrm = lambda shape, s=0.02: (s * jax.random.normal(next(ks), shape)).astype(jnp.float32)

    tok_emb = jnp.zeros((Vp, D), jnp.float32).at[:V].set(nrm((V, D)))
    head_w = jnp.zeros((D, Vp), jnp.float32).at[:, :V].set(nrm((D, V)))
    head_b = jnp.zeros((Vp,), jnp.float32)

    # attention scale folded into W_Q / b_Q (one-time parameter transform)
    wq = nrm((L, D, D)) * scale
    wk = nrm((L, D, D))
    wv = nrm((L, D, D))
    bq = jnp.zeros((L, D), jnp.float32)          # already scaled (zero)
    bk = jnp.zeros((L, D), jnp.float32)
    bv = jnp.zeros((L, D), jnp.float32)
    wqkv = jnp.concatenate([wq, wk, wv], axis=-1)        # (L, D, 3D)
    bqkv = jnp.concatenate([bq, bk, bv], axis=-1)        # (L, 3D)

    wo = nrm((L, D, D)); bo = jnp.zeros((L, D), jnp.float32)
    w1 = nrm((L, D, M)); b1 = jnp.zeros((L, M), jnp.float32)
    w2 = nrm((L, M, D)); b2 = jnp.zeros((L, D), jnp.float32)

    ln1_g = jnp.ones((L, D), jnp.float32); ln1_b = jnp.zeros((L, D), jnp.float32)
    ln2_g = jnp.ones((L, D), jnp.float32); ln2_b = jnp.zeros((L, D), jnp.float32)

    # pack per-layer small vectors into one (L, 8, 128) slab: one DMA instead of ~12
    layer_vecs = jnp.zeros((L, 8, 128), jnp.float32)
    layer_vecs = layer_vecs.at[:, 0, :D].set(ln1_g)
    layer_vecs = layer_vecs.at[:, 1, :D].set(ln1_b)
    layer_vecs = layer_vecs.at[:, 2, :3 * D].set(bqkv)
    layer_vecs = layer_vecs.at[:, 3, :D].set(bo)
    layer_vecs = layer_vecs.at[:, 4, :D].set(ln2_g)
    layer_vecs = layer_vecs.at[:, 5, :D].set(ln2_b)
    layer_vecs = layer_vecs.at[:, 6, :M].set(b1)
    layer_vecs = layer_vecs.at[:, 7, :D].set(b2)

    # misc vectors: [conv_b, lnf_g, lnf_b, head_b]
    misc_vecs = jnp.zeros((4, 128), jnp.float32)
    misc_vecs = misc_vecs.at[1, :D].set(jnp.ones((D,), jnp.float32))     # lnf_g
    misc_vecs = misc_vecs.at[3, :Vp].set(head_b)                          # head_b

    params = dict(
        # "VQGAN encoder": patch conv (kernel=stride=patch) as (C*p*p, D) matmul + codebook
        # (kept f32: used once; f32 keeps the VQ argmin faithful)
        conv_w=nrm((Cp2, D), 0.1),
        codebook=nrm((K, D), 0.5),
        # transformer weights cast to bf16 ONCE at the boundary
        tok_emb=tok_emb.astype(jnp.bfloat16),
        pos_emb=nrm((T, D)),
        wqkv=wqkv.astype(jnp.bfloat16),
        wo=wo.astype(jnp.bfloat16),
        w1=w1.astype(jnp.bfloat16),
        w2=w2.astype(jnp.bfloat16),
        head_w=head_w.astype(jnp.bfloat16),
        layer_vecs=layer_vecs,
        misc_vecs=misc_vecs,
    )
    return params


# --------------------------------- forward ------------------------------------

@jax.jit
def maskgit_forward(x, params, key):
    """Mirrors MaskGit.forward: encode -> random topk mask -> transformer -> (logits, target)."""
    c = CFG
    B, C, H, W = x.shape
    p = c["patch"]
    T = c["num_image_tokens"]
    N = B * T
    D, M, L = c["latent_dim"], c["mlp_dim"], c["n_layers"]
    K, Vp = c["codebook"], c["vocab_pad"]
    Cpp = C * p * p

    # im2col for the kernel=stride=p patch conv (XLA glue, tiny)
    xp = x.reshape(B, C, H // p, p, W // p, p).transpose(0, 2, 4, 1, 3, 5)
    patches = xp.reshape(N, Cpp)

    # device-side random top-k masking: r = floor(U()*T); mask = top-r random scores per row
    k_r, k_s = jax.random.split(key)
    r = jnp.floor(jax.random.uniform(k_r, ()) * T).astype(jnp.int32)
    rand = jax.random.uniform(k_s, (B, T))
    order = jnp.argsort(-rand, axis=1)
    ranks = jnp.argsort(order, axis=1)
    mask = ranks < r                                        # (B, T) bool
    mask_in = mask.reshape(N, 1).astype(jnp.int32)

    kernel = functools.partial(
        _maskgit_kernel,
        seq=T, n_layers=L, n_heads=c["n_heads"],
        mask_token_id=c["codebook"], codebook_size=c["codebook"], eps=1e-5)

    full2 = lambda shape: pl.BlockSpec(shape, lambda b: (0, 0))
    full3 = lambda shape: pl.BlockSpec(shape, lambda b: (0, 0, 0))

    logits_pad, z_idx = pl.pallas_call(
        kernel,
        grid=(B,),                                          # batch-parallel (2 TCs on v7x)
        in_specs=[
            pl.BlockSpec((T, Cpp), lambda b: (b, 0)),       # patches   (per-batch)
            pl.BlockSpec((T, 1), lambda b: (b, 0)),         # mask      (per-batch)
            full2((Cpp, D)),                                # conv_w
            full2((K, D)),                                  # codebook
            full2((Vp, D)),                                 # tok_emb   (bf16)
            full2((T, D)),                                  # pos_emb
            full3((L, D, 3 * D)),                           # wqkv      (bf16)
            full3((L, D, D)),                               # wo        (bf16)
            full3((L, D, M)),                               # w1        (bf16)
            full3((L, M, D)),                               # w2        (bf16)
            full2((D, Vp)),                                 # head_w    (bf16)
            full3((L, 8, 128)),                             # packed per-layer vectors
            full2((4, 128)),                                # packed misc vectors
        ],
        out_specs=(
            pl.BlockSpec((T, Vp), lambda b: (b, 0)),        # logits (lane-dense 128)
            pl.BlockSpec((T, 1), lambda b: (b, 0)),         # z_idx
        ),
        out_shape=(jax.ShapeDtypeStruct((N, Vp), jnp.float32),
                   jax.ShapeDtypeStruct((N, 1), jnp.int32)),
        compiler_params=pltpu.CompilerParams(
            dimension_semantics=("parallel",)),
    )(patches, mask_in, params["conv_w"], params["codebook"], params["tok_emb"],
      params["pos_emb"], params["wqkv"], params["wo"], params["w1"], params["w2"],
      params["head_w"], params["layer_vecs"], params["misc_vecs"])

    logits = logits_pad[:, :c["vocab"]].reshape(B, T, c["vocab"])
    target = z_idx.reshape(B, T)
    return logits, target


# --------------------------------- driver -------------------------------------

if __name__ == "__main__":
    key = jax.random.PRNGKey(0)
    k_param, k_x, k_mask = jax.random.split(key, 3)

    params = init_params(k_param)
    x = jax.random.normal(
        k_x, (CFG["batch"], CFG["in_ch"], CFG["img"], CFG["img"]), dtype=jnp.float32)  # NCHW

    logits, target = maskgit_forward(x, params, k_mask)
    logits = jax.block_until_ready(logits)
    target = jax.block_until_ready(target)

    assert logits.shape == (CFG["batch"], CFG["num_image_tokens"], CFG["vocab"])
    assert target.shape == (CFG["batch"], CFG["num_image_tokens"])
    assert bool(jnp.all(jnp.isfinite(logits)))
    assert bool(jnp.all((target >= 0) & (target < CFG["codebook"])))
    print("KERNEL_OK")
</pallas_src>

<mosaic_0001>
module attributes {stable_mosaic.version = 11 : i64} {
  func.func @_maskgit_kernel(%arg0: i32, %arg1: memref<16x48xf32, #tpu.memory_space<vmem>>, %arg2: memref<16x1xi32, #tpu.memory_space<vmem>>, %arg3: memref<48x32xf32, #tpu.memory_space<vmem>>, %arg4: memref<64x32xf32, #tpu.memory_space<vmem>>, %arg5: memref<128x32xbf16, #tpu.memory_space<vmem>>, %arg6: memref<16x32xf32, #tpu.memory_space<vmem>>, %arg7: memref<2x32x96xbf16, #tpu.memory_space<vmem>>, %arg8: memref<2x32x32xbf16, #tpu.memory_space<vmem>>, %arg9: memref<2x32x64xbf16, #tpu.memory_space<vmem>>, %arg10: memref<2x64x32xbf16, #tpu.memory_space<vmem>>, %arg11: memref<32x128xbf16, #tpu.memory_space<vmem>>, %arg12: memref<2x8x128xf32, #tpu.memory_space<vmem>>, %arg13: memref<4x128xf32, #tpu.memory_space<vmem>>, %arg14: memref<16x128xf32, #tpu.memory_space<vmem>>, %arg15: memref<16x1xi32, #tpu.memory_space<vmem>>) attributes {dimension_semantics = [#tpu.dimension_semantics<parallel>], iteration_bounds = array<i64: 2>, scalar_prefetch = 0 : i64, scratch_operands = 0 : i64, tpu.core_type = #tpu.core_type<tc>, window_params = [{transform_indices = @transform_0, window_bounds = array<i64: 16, 48>}, {transform_indices = @transform_1, window_bounds = array<i64: 16, 1>}, {pipeline_mode = #tpu.pipeline_mode<synchronous>, transform_indices = @transform_2, window_bounds = array<i64: 48, 32>}, {pipeline_mode = #tpu.pipeline_mode<synchronous>, transform_indices = @transform_3, window_bounds = array<i64: 64, 32>}, {pipeline_mode = #tpu.pipeline_mode<synchronous>, transform_indices = @transform_4, window_bounds = array<i64: 128, 32>}, {pipeline_mode = #tpu.pipeline_mode<synchronous>, transform_indices = @transform_5, window_bounds = array<i64: 16, 32>}, {pipeline_mode = #tpu.pipeline_mode<synchronous>, transform_indices = @transform_6, window_bounds = array<i64: 2, 32, 96>}, {pipeline_mode = #tpu.pipeline_mode<synchronous>, transform_indices = @transform_7, window_bounds = array<i64: 2, 32, 32>}, {pipeline_mode = #tpu.pipeline_mode<synchronous>, transform_indices = @transform_8, window_bounds = array<i64: 2, 32, 64>}, {pipeline_mode = #tpu.pipeline_mode<synchronous>, transform_indices = @transform_9, window_bounds = array<i64: 2, 64, 32>}, {pipeline_mode = #tpu.pipeline_mode<synchronous>, transform_indices = @transform_10, window_bounds = array<i64: 32, 128>}, {pipeline_mode = #tpu.pipeline_mode<synchronous>, transform_indices = @transform_11, window_bounds = array<i64: 2, 8, 128>}, {pipeline_mode = #tpu.pipeline_mode<synchronous>, transform_indices = @transform_12, window_bounds = array<i64: 4, 128>}, {transform_indices = @transform_13, window_bounds = array<i64: 16, 128>}, {transform_indices = @transform_14, window_bounds = array<i64: 16, 1>}]} {
    %c0 = arith.constant 0 : index
    %c0_0 = arith.constant 0 : index
    %0 = vector.load %arg13[%c0, %c0_0] : memref<4x128xf32, #tpu.memory_space<vmem>>, vector<4x128xf32>
    %1 = vector.extract_strided_slice %0 {offsets = [0, 0], sizes = [1, 32], strides = [1, 1]} : vector<4x128xf32> to vector<1x32xf32>
    %2 = vector.extract_strided_slice %0 {offsets = [1, 0], sizes = [1, 32], strides = [1, 1]} : vector<4x128xf32> to vector<1x32xf32>
    %3 = vector.extract_strided_slice %0 {offsets = [2, 0], sizes = [1, 32], strides = [1, 1]} : vector<4x128xf32> to vector<1x32xf32>
    %4 = vector.extract_strided_slice %0 {offsets = [3, 0], sizes = [1, 128], strides = [1, 1]} : vector<4x128xf32> to vector<1x128xf32>
    %c0_1 = arith.constant 0 : index
    %c0_2 = arith.constant 0 : index
    %5 = vector.load %arg1[%c0_1, %c0_2] : memref<16x48xf32, #tpu.memory_space<vmem>>, vector<16x48xf32>
    %c0_3 = arith.constant 0 : index
    %c0_4 = arith.constant 0 : index
    %6 = vector.load %arg3[%c0_3, %c0_4] : memref<48x32xf32, #tpu.memory_space<vmem>>, vector<48x32xf32>
    %cst = arith.constant dense<0.000000e+00> : vector<16x32xf32>
    %7 = tpu.matmul %5, %6, %cst {dimension_numbers = #tpu.dot_dimension_numbers<[1], [0], [0], [1], [0, 0, 1, 1], [], []>} : vector<16x48xf32>, vector<48x32xf32>, vector<16x32xf32> -> vector<16x32xf32>
    %8 = vector.broadcast %1 : vector<1x32xf32> to vector<16x32xf32>
    %9 = arith.addf %7, %8 : vector<16x32xf32>
    %c0_5 = arith.constant 0 : index
    %c0_6 = arith.constant 0 : index
    %10 = vector.load %arg4[%c0_5, %c0_6] : memref<64x32xf32, #tpu.memory_space<vmem>>, vector<64x32xf32>
    %11 = arith.mulf %9, %9 : vector<16x32xf32>
    %cst_7 = arith.constant dense<0.000000e+00> : vector<16xf32>
    %12 = vector.multi_reduction <add>, %11, %cst_7 [1] : vector<16x32xf32> to vector<16xf32>
    %13 = vector.shape_cast %12 : vector<16xf32> to vector<16x1xf32>
    %14 = arith.mulf %10, %10 : vector<64x32xf32>
    %cst_8 = arith.constant dense<0.000000e+00> : vector<64xf32>
    %15 = vector.multi_reduction <add>, %14, %cst_8 [1] : vector<64x32xf32> to vector<64xf32>
    %16 = vector.shape_cast %15 : vector<64xf32> to vector<64x1xf32>
    %17 = tpu.transpose %16, [1, 0] : vector<64x1xf32> -> vector<1x64xf32>
    %18 = tpu.transpose %10, [1, 0] : vector<64x32xf32> -> vector<32x64xf32>
    %cst_9 = arith.constant dense<0.000000e+00> : vector<16x64xf32>
    %19 = tpu.matmul %9, %18, %cst_9 {dimension_numbers = #tpu.dot_dimension_numbers<[1], [0], [0], [1], [0, 0, 1, 1], [], []>} : vector<16x32xf32>, vector<32x64xf32>, vector<16x64xf32> -> vector<16x64xf32>
    %cst_10 = arith.constant 2.000000e+00 : f32
    %20 = vector.broadcast %cst_10 : f32 to vector<16x64xf32>
    %21 = arith.mulf %20, %19 : vector<16x64xf32>
    %22 = vector.broadcast %13 : vector<16x1xf32> to vector<16x64xf32>
    %23 = arith.subf %22, %21 : vector<16x64xf32>
    %24 = vector.broadcast %17 : vector<1x64xf32> to vector<16x64xf32>
    %25 = arith.addf %23, %24 : vector<16x64xf32>
    %cst_11 = arith.constant dense<0x7F800000> : vector<16xf32>
    %26 = vector.multi_reduction <minimumf>, %25, %cst_11 [1] : vector<16x64xf32> to vector<16xf32>
    %27 = vector.shape_cast %26 : vector<16xf32> to vector<16x1xf32>
    %28 = tpu.iota {dimensions = array<i32: 1>} : vector<16x64xi32>
    %29 = vector.broadcast %27 : vector<16x1xf32> to vector<16x64xf32>
    %30 = arith.cmpf ole, %25, %29 : vector<16x64xf32>
    %c64_i32 = arith.constant 64 : i32
    %31 = vector.broadcast %c64_i32 : i32 to vector<16x64xi32>
    %32 = arith.select %30, %28, %31 : vector<16x64xi1>, vector<16x64xi32>
    %cst_12 = arith.constant dense<2147483647> : vector<16xi32>
    %33 = vector.multi_reduction <minsi>, %32, %cst_12 [1] : vector<16x64xi32> to vector<16xi32>
    %34 = vector.shape_cast %33 : vector<16xi32> to vector<16x1xi32>
    %c63_i32 = arith.constant 63 : i32
    %35 = vector.broadcast %c63_i32 : i32 to vector<16x1xi32>
    %36 = arith.minsi %34, %35 : vector<16x1xi32>
    %c0_13 = arith.constant 0 : index
    %c0_14 = arith.constant 0 : index
    %37 = vector.load %arg15[%c0_13, %c0_14] : memref<16x1xi32, #tpu.memory_space<vmem>>, vector<16x1xi32>
    tpu.vector_store %arg15[%c0_13, %c0_14], %36 {strides = array<i32>} : memref<16x1xi32, #tpu.memory_space<vmem>>, vector<16x1xi32>,
    %c0_15 = arith.constant 0 : index
    %c0_16 = arith.constant 0 : index
    %38 = vector.load %arg2[%c0_15, %c0_16] : memref<16x1xi32, #tpu.memory_space<vmem>>, vector<16x1xi32>
    %c0_i32 = arith.constant 0 : i32
    %39 = vector.broadcast %c0_i32 : i32 to vector<16x1xi32>
    %40 = arith.cmpi sgt, %38, %39 : vector<16x1xi32>
    %c64_i32_17 = arith.constant 64 : i32
    %41 = vector.broadcast %c64_i32_17 : i32 to vector<16x1xi32>
    %42 = arith.select %40, %41, %36 : vector<16x1xi1>, vector<16x1xi32>
    %43 = tpu.iota {dimensions = array<i32: 1>} : vector<16x128xi32>
    %44 = vector.broadcast %42 : vector<16x1xi32> to vector<16x128xi32>
    %45 = arith.cmpi eq, %43, %44 : vector<16x128xi32>
    %46 = arith.extui %45 : vector<16x128xi1> to vector<16x128xi32>
    %47 = arith.sitofp %46 : vector<16x128xi32> to vector<16x128xf32>
    %48 = arith.truncf %47 : vector<16x128xf32> to vector<16x128xbf16>
    %c0_18 = arith.constant 0 : index
    %c0_19 = arith.constant 0 : index
    %49 = vector.load %arg5[%c0_18, %c0_19] : memref<128x32xbf16, #tpu.memory_space<vmem>>, vector<128x32xbf16>
    %cst_20 = arith.constant dense<0.000000e+00> : vector<16x32xf32>
    %50 = tpu.matmul %48, %49, %cst_20 {dimension_numbers = #tpu.dot_dimension_numbers<[1], [0], [0], [1], [0, 0, 1, 1], [], []>} : vector<16x128xbf16>, vector<128x32xbf16>, vector<16x32xf32> -> vector<16x32xf32>
    %c0_21 = arith.constant 0 : index
    %c0_22 = arith.constant 0 : index
    %51 = vector.load %arg6[%c0_21, %c0_22] : memref<16x32xf32, #tpu.memory_space<vmem>>, vector<16x32xf32>
    %52 = arith.addf %50, %51 : vector<16x32xf32>
    %c0_23 = arith.constant 0 : index
    %c0_24 = arith.constant 0 : index
    %c0_25 = arith.constant 0 : index
    %53 = vector.load %arg12[%c0_23, %c0_24, %c0_25] : memref<2x8x128xf32, #tpu.memory_space<vmem>>, vector<1x8x128xf32>
    %54 = vector.shape_cast %53 : vector<1x8x128xf32> to vector<8x128xf32>
    %55 = vector.extract_strided_slice %54 {offsets = [0, 0], sizes = [1, 32], strides = [1, 1]} : vector<8x128xf32> to vector<1x32xf32>
    %56 = vector.extract_strided_slice %54 {offsets = [1, 0], sizes = [1, 32], strides = [1, 1]} : vector<8x128xf32> to vector<1x32xf32>
    %57 = vector.extract_strided_slice %54 {offsets = [2, 0], sizes = [1, 96], strides = [1, 1]} : vector<8x128xf32> to vector<1x96xf32>
    %58 = vector.extract_strided_slice %54 {offsets = [3, 0], sizes = [1, 32], strides = [1, 1]} : vector<8x128xf32> to vector<1x32xf32>
    %59 = vector.extract_strided_slice %54 {offsets = [4, 0], sizes = [1, 32], strides = [1, 1]} : vector<8x128xf32> to vector<1x32xf32>
    %60 = vector.extract_strided_slice %54 {offsets = [5, 0], sizes = [1, 32], strides = [1, 1]} : vector<8x128xf32> to vector<1x32xf32>
    %61 = vector.extract_strided_slice %54 {offsets = [6, 0], sizes = [1, 64], strides = [1, 1]} : vector<8x128xf32> to vector<1x64xf32>
    %62 = vector.extract_strided_slice %54 {offsets = [7, 0], sizes = [1, 32], strides = [1, 1]} : vector<8x128xf32> to vector<1x32xf32>
    %cst_26 = arith.constant dense<0.000000e+00> : vector<16xf32>
    %63 = vector.multi_reduction <add>, %52, %cst_26 [1] : vector<16x32xf32> to vector<16xf32>
    %64 = vector.shape_cast %63 : vector<16xf32> to vector<16x1xf32>
    %cst_27 = arith.constant 3.200000e+01 : f32
    %65 = vector.broadcast %cst_27 : f32 to vector<16x1xf32>
    %66 = arith.divf %64, %65 : vector<16x1xf32>
    %67 = vector.broadcast %66 : vector<16x1xf32> to vector<16x32xf32>
    %68 = arith.subf %52, %67 : vector<16x32xf32>
    %69 = vector.broadcast %66 : vector<16x1xf32> to vector<16x32xf32>
    %70 = arith.subf %52, %69 : vector<16x32xf32>
    %71 = arith.mulf %68, %70 : vector<16x32xf32>
    %cst_28 = arith.constant dense<0.000000e+00> : vector<16xf32>
    %72 = vector.multi_reduction <add>, %71, %cst_28 [1] : vector<16x32xf32> to vector<16xf32>
    %73 = vector.shape_cast %72 : vector<16xf32> to vector<16x1xf32>
    %cst_29 = arith.constant 3.200000e+01 : f32
    %74 = vector.broadcast %cst_29 : f32 to vector<16x1xf32>
    %75 = arith.divf %73, %74 : vector<16x1xf32>
    %76 = vector.broadcast %66 : vector<16x1xf32> to vector<16x32xf32>
    %77 = arith.subf %52, %76 : vector<16x32xf32>
    %cst_30 = arith.constant 9.99999974E-6 : f32
    %78 = vector.broadcast %cst_30 : f32 to vector<16x1xf32>
    %79 = arith.addf %75, %78 : vector<16x1xf32>
    %80 = math.rsqrt %79 : vector<16x1xf32>
    %81 = vector.broadcast %80 : vector<16x1xf32> to vector<16x32xf32>
    %82 = arith.mulf %77, %81 : vector<16x32xf32>
    %83 = vector.broadcast %55 : vector<1x32xf32> to vector<16x32xf32>
    %84 = arith.mulf %82, %83 : vector<16x32xf32>
    %85 = vector.broadcast %56 : vector<1x32xf32> to vector<16x32xf32>
    %86 = arith.addf %84, %85 : vector<16x32xf32>
    %c0_31 = arith.constant 0 : index
    %c0_32 = arith.constant 0 : index
    %c0_33 = arith.constant 0 : index
    %87 = vector.load %arg7[%c0_31, %c0_32, %c0_33] : memref<2x32x96xbf16, #tpu.memory_space<vmem>>, vector<1x32x96xbf16>
    %88 = vector.shape_cast %87 : vector<1x32x96xbf16> to vector<32x96xbf16>
    %89 = arith.truncf %86 : vector<16x32xf32> to vector<16x32xbf16>
    %cst_34 = arith.constant dense<0.000000e+00> : vector<16x96xf32>
    %90 = tpu.matmul %89, %88, %cst_34 {dimension_numbers = #tpu.dot_dimension_numbers<[1], [0], [0], [1], [0, 0, 1, 1], [], []>} : vector<16x32xbf16>, vector<32x96xbf16>, vector<16x96xf32> -> vector<16x96xf32>
    %91 = vector.broadcast %57 : vector<1x96xf32> to vector<16x96xf32>
    %92 = arith.addf %90, %91 : vector<16x96xf32>
    %93 = arith.truncf %92 : vector<16x96xf32> to vector<16x96xbf16>
    %c0_35 = arith.constant 0 : index
    %c0_36 = arith.constant 0 : index
    %c0_37 = arith.constant 0 : index
    %94 = vector.load %arg8[%c0_35, %c0_36, %c0_37] : memref<2x32x32xbf16, #tpu.memory_space<vmem>>, vector<1x32x32xbf16>
    %95 = vector.shape_cast %94 : vector<1x32x32xbf16> to vector<32x32xbf16>
    %cst_38 = arith.constant 0.000000e+00 : f32
    %96 = vector.broadcast %cst_38 : f32 to vector<16x32xf32>
    %97 = vector.extract_strided_slice %93 {offsets = [0, 0], sizes = [16, 8], strides = [1, 1]} : vector<16x96xbf16> to vector<16x8xbf16>
    %98 = vector.extract_strided_slice %93 {offsets = [0, 32], sizes = [16, 8], strides = [1, 1]} : vector<16x96xbf16> to vector<16x8xbf16>
    %99 = vector.extract_strided_slice %93 {offsets = [0, 64], sizes = [16, 8], strides = [1, 1]} : vector<16x96xbf16> to vector<16x8xbf16>
    %cst_39 = arith.constant dense<0.000000e+00> : vector<16x16xf32>
    %100 = tpu.matmul %97, %98, %cst_39 {dimension_numbers = #tpu.dot_dimension_numbers<[1], [1], [0], [0], [0, 0, 1, 0], [], []>} : vector<16x8xbf16>, vector<16x8xbf16>, vector<16x16xf32> -> vector<16x16xf32>
    %cst_40 = arith.constant dense<0xFF800000> : vector<16xf32>
    %101 = vector.multi_reduction <maximumf>, %100, %cst_40 [1] : vector<16x16xf32> to vector<16xf32>
    %102 = vector.shape_cast %101 : vector<16xf32> to vector<16x1xf32>
    %103 = vector.broadcast %102 : vector<16x1xf32> to vector<16x16xf32>
    %104 = arith.subf %100, %103 : vector<16x16xf32>
    %105 = math.exp %104 : vector<16x16xf32>
    %cst_41 = arith.constant dense<0.000000e+00> : vector<16xf32>
    %106 = vector.multi_reduction <add>, %105, %cst_41 [1] : vector<16x16xf32> to vector<16xf32>
    %107 = vector.shape_cast %106 : vector<16xf32> to vector<16x1xf32>
    %108 = tpu.reciprocal %107 {approx = true} : vector<16x1xf32> -> vector<16x1xf32>
    %109 = vector.broadcast %108 : vector<16x1xf32> to vector<16x16xf32>
    %110 = arith.mulf %105, %109 : vector<16x16xf32>
    %111 = arith.truncf %110 : vector<16x16xf32> to vector<16x16xbf16>
    %cst_42 = arith.constant dense<0.000000e+00> : vector<16x8xf32>
    %112 = tpu.matmul %111, %99, %cst_42 {dimension_numbers = #tpu.dot_dimension_numbers<[1], [0], [0], [1], [0, 0, 1, 1], [], []>} : vector<16x16xbf16>, vector<16x8xbf16>, vector<16x8xf32> -> vector<16x8xf32>
    %113 = arith.truncf %112 : vector<16x8xf32> to vector<16x8xbf16>
    %114 = vector.extract_strided_slice %95 {offsets = [0, 0], sizes = [8, 32], strides = [1, 1]} : vector<32x32xbf16> to vector<8x32xbf16>
    %cst_43 = arith.constant dense<0.000000e+00> : vector<16x32xf32>
    %115 = tpu.matmul %113, %114, %cst_43 {dimension_numbers = #tpu.dot_dimension_numbers<[1], [0], [0], [1], [0, 0, 1, 1], [], []>} : vector<16x8xbf16>, vector<8x32xbf16>, vector<16x32xf32> -> vector<16x32xf32>
    %116 = arith.addf %96, %115 : vector<16x32xf32>
    %117 = vector.extract_strided_slice %93 {offsets = [0, 8], sizes = [16, 8], strides = [1, 1]} : vector<16x96xbf16> to vector<16x8xbf16>
    %118 = vector.extract_strided_slice %93 {offsets = [0, 40], sizes = [16, 8], strides = [1, 1]} : vector<16x96xbf16> to vector<16x8xbf16>
    %119 = vector.extract_strided_slice %93 {offsets = [0, 72], sizes = [16, 8], strides = [1, 1]} : vector<16x96xbf16> to vector<16x8xbf16>
    %cst_44 = arith.constant dense<0.000000e+00> : vector<16x16xf32>
    %120 = tpu.matmul %117, %118, %cst_44 {dimension_numbers = #tpu.dot_dimension_numbers<[1], [1], [0], [0], [0, 0, 1, 0], [], []>} : vector<16x8xbf16>, vector<16x8xbf16>, vector<16x16xf32> -> vector<16x16xf32>
    %cst_45 = arith.constant dense<0xFF800000> : vector<16xf32>
    %121 = vector.multi_reduction <maximumf>, %120, %cst_45 [1] : vector<16x16xf32> to vector<16xf32>
    %122 = vector.shape_cast %121 : vector<16xf32> to vector<16x1xf32>
    %123 = vector.broadcast %122 : vector<16x1xf32> to vector<16x16xf32>
    %124 = arith.subf %120, %123 : vector<16x16xf32>
    %125 = math.exp %124 : vector<16x16xf32>
    %cst_46 = arith.constant dense<0.000000e+00> : vector<16xf32>
    %126 = vector.multi_reduction <add>, %125, %cst_46 [1] : vector<16x16xf32> to vector<16xf32>
    %127 = vector.shape_cast %126 : vector<16xf32> to vector<16x1xf32>
    %128 = tpu.reciprocal %127 {approx = true} : vector<16x1xf32> -> vector<16x1xf32>
    %129 = vector.broadcast %128 : vector<16x1xf32> to vector<16x16xf32>
    %130 = arith.mulf %125, %129 : vector<16x16xf32>
    %131 = arith.truncf %130 : vector<16x16xf32> to vector<16x16xbf16>
    %cst_47 = arith.constant dense<0.000000e+00> : vector<16x8xf32>
    %132 = tpu.matmul %131, %119, %cst_47 {dimension_numbers = #tpu.dot_dimension_numbers<[1], [0], [0], [1], [0, 0, 1, 1], [], []>} : vector<16x16xbf16>, vector<16x8xbf16>, vector<16x8xf32> -> vector<16x8xf32>
    %133 = arith.truncf %132 : vector<16x8xf32> to vector<16x8xbf16>
    %134 = vector.extract_strided_slice %95 {offsets = [8, 0], sizes = [8, 32], strides = [1, 1]} : vector<32x32xbf16> to vector<8x32xbf16>
    %cst_48 = arith.constant dense<0.000000e+00> : vector<16x32xf32>
    %135 = tpu.matmul %133, %134, %cst_48 {dimension_numbers = #tpu.dot_dimension_numbers<[1], [0], [0], [1], [0, 0, 1, 1], [], []>} : vector<16x8xbf16>, vector<8x32xbf16>, vector<16x32xf32> -> vector<16x32xf32>
    %136 = arith.addf %116, %135 : vector<16x32xf32>
    %137 = vector.extract_strided_slice %93 {offsets = [0, 16], sizes = [16, 8], strides = [1, 1]} : vector<16x96xbf16> to vector<16x8xbf16>
    %138 = vector.extract_strided_slice %93 {offsets = [0, 48], sizes = [16, 8], strides = [1, 1]} : vector<16x96xbf16> to vector<16x8xbf16>
    %139 = vector.extract_strided_slice %93 {offsets = [0, 80], sizes = [16, 8], strides = [1, 1]} : vector<16x96xbf16> to vector<16x8xbf16>
    %cst_49 = arith.constant dense<0.000000e+00> : vector<16x16xf32>
    %140 = tpu.matmul %137, %138, %cst_49 {dimension_numbers = #tpu.dot_dimension_numbers<[1], [1], [0], [0], [0, 0, 1, 0], [], []>} : vector<16x8xbf16>, vector<16x8xbf16>, vector<16x16xf32> -> vector<16x16xf32>
    %cst_50 = arith.constant dense<0xFF800000> : vector<16xf32>
    %141 = vector.multi_reduction <maximumf>, %140, %cst_50 [1] : vector<16x16xf32> to vector<16xf32>
    %142 = vector.shape_cast %141 : vector<16xf32> to vector<16x1xf32>
    %143 = vector.broadcast %142 : vector<16x1xf32> to vector<16x16xf32>
    %144 = arith.subf %140, %143 : vector<16x16xf32>
    %145 = math.exp %144 : vector<16x16xf32>
    %cst_51 = arith.constant dense<0.000000e+00> : vector<16xf32>
    %146 = vector.multi_reduction <add>, %145, %cst_51 [1] : vector<16x16xf32> to vector<16xf32>
    %147 = vector.shape_cast %146 : vector<16xf32> to vector<16x1xf32>
    %148 = tpu.reciprocal %147 {approx = true} : vector<16x1xf32> -> vector<16x1xf32>
    %149 = vector.broadcast %148 : vector<16x1xf32> to vector<16x16xf32>
    %150 = arith.mulf %145, %149 : vector<16x16xf32>
    %151 = arith.truncf %150 : vector<16x16xf32> to vector<16x16xbf16>
    %cst_52 = arith.constant dense<0.000000e+00> : vector<16x8xf32>
    %152 = tpu.matmul %151, %139, %cst_52 {dimension_numbers = #tpu.dot_dimension_numbers<[1], [0], [0], [1], [0, 0, 1, 1], [], []>} : vector<16x16xbf16>, vector<16x8xbf16>, vector<16x8xf32> -> vector<16x8xf32>
    %153 = arith.truncf %152 : vector<16x8xf32> to vector<16x8xbf16>
    %154 = vector.extract_strided_slice %95 {offsets = [16, 0], sizes = [8, 32], strides = [1, 1]} : vector<32x32xbf16> to vector<8x32xbf16>
    %cst_53 = arith.constant dense<0.000000e+00> : vector<16x32xf32>
    %155 = tpu.matmul %153, %154, %cst_53 {dimension_numbers = #tpu.dot_dimension_numbers<[1], [0], [0], [1], [0, 0, 1, 1], [], []>} : vector<16x8xbf16>, vector<8x32xbf16>, vector<16x32xf32> -> vector<16x32xf32>
    %156 = arith.addf %136, %155 : vector<16x32xf32>
    %157 = vector.extract_strided_slice %93 {offsets = [0, 24], sizes = [16, 8], strides = [1, 1]} : vector<16x96xbf16> to vector<16x8xbf16>
    %158 = vector.extract_strided_slice %93 {offsets = [0, 56], sizes = [16, 8], strides = [1, 1]} : vector<16x96xbf16> to vector<16x8xbf16>
    %159 = vector.extract_strided_slice %93 {offsets = [0, 88], sizes = [16, 8], strides = [1, 1]} : vector<16x96xbf16> to vector<16x8xbf16>
    %cst_54 = arith.constant dense<0.000000e+00> : vector<16x16xf32>
    %160 = tpu.matmul %157, %158, %cst_54 {dimension_numbers = #tpu.dot_dimension_numbers<[1], [1], [0], [0], [0, 0, 1, 0], [], []>} : vector<16x8xbf16>, vector<16x8xbf16>, vector<16x16xf32> -> vector<16x16xf32>
    %cst_55 = arith.constant dense<0xFF800000> : vector<16xf32>
    %161 = vector.multi_reduction <maximumf>, %160, %cst_55 [1] : vector<16x16xf32> to vector<16xf32>
    %162 = vector.shape_cast %161 : vector<16xf32> to vector<16x1xf32>
    %163 = vector.broadcast %162 : vector<16x1xf32> to vector<16x16xf32>
    %164 = arith.subf %160, %163 : vector<16x16xf32>
    %165 = math.exp %164 : vector<16x16xf32>
    %cst_56 = arith.constant dense<0.000000e+00> : vector<16xf32>
    %166 = vector.multi_reduction <add>, %165, %cst_56 [1] : vector<16x16xf32> to vector<16xf32>
    %167 = vector.shape_cast %166 : vector<16xf32> to vector<16x1xf32>
    %168 = tpu.reciprocal %167 {approx = true} : vector<16x1xf32> -> vector<16x1xf32>
    %169 = vector.broadcast %168 : vector<16x1xf32> to vector<16x16xf32>
    %170 = arith.mulf %165, %169 : vector<16x16xf32>
    %171 = arith.truncf %170 : vector<16x16xf32> to vector<16x16xbf16>
    %cst_57 = arith.constant dense<0.000000e+00> : vector<16x8xf32>
    %172 = tpu.matmul %171, %159, %cst_57 {dimension_numbers = #tpu.dot_dimension_numbers<[1], [0], [0], [1], [0, 0, 1, 1], [], []>} : vector<16x16xbf16>, vector<16x8xbf16>, vector<16x8xf32> -> vector<16x8xf32>
    %173 = arith.truncf %172 : vector<16x8xf32> to vector<16x8xbf16>
    %174 = vector.extract_strided_slice %95 {offsets = [24, 0], sizes = [8, 32], strides = [1, 1]} : vector<32x32xbf16> to vector<8x32xbf16>
    %cst_58 = arith.constant dense<0.000000e+00> : vector<16x32xf32>
    %175 = tpu.matmul %173, %174, %cst_58 {dimension_numbers = #tpu.dot_dimension_numbers<[1], [0], [0], [1], [0, 0, 1, 1], [], []>} : vector<16x8xbf16>, vector<8x32xbf16>, vector<16x32xf32> -> vector<16x32xf32>
    %176 = arith.addf %156, %175 : vector<16x32xf32>
    %177 = arith.addf %52, %176 : vector<16x32xf32>
    %178 = vector.broadcast %58 : vector<1x32xf32> to vector<16x32xf32>
    %179 = arith.addf %177, %178 : vector<16x32xf32>
    %cst_59 = arith.constant dense<0.000000e+00> : vector<16xf32>
    %180 = vector.multi_reduction <add>, %179, %cst_59 [1] : vector<16x32xf32> to vector<16xf32>
    %181 = vector.shape_cast %180 : vector<16xf32> to vector<16x1xf32>
    %cst_60 = arith.constant 3.200000e+01 : f32
    %182 = vector.broadcast %cst_60 : f32 to vector<16x1xf32>
    %183 = arith.divf %181, %182 : vector<16x1xf32>
    %184 = vector.broadcast %183 : vector<16x1xf32> to vector<16x32xf32>
    %185 = arith.subf %179, %184 : vector<16x32xf32>
    %186 = vector.broadcast %183 : vector<16x1xf32> to vector<16x32xf32>
    %187 = arith.subf %179, %186 : vector<16x32xf32>
    %188 = arith.mulf %185, %187 : vector<16x32xf32>
    %cst_61 = arith.constant dense<0.000000e+00> : vector<16xf32>
    %189 = vector.multi_reduction <add>, %188, %cst_61 [1] : vector<16x32xf32> to vector<16xf32>
    %190 = vector.shape_cast %189 : vector<16xf32> to vector<16x1xf32>
    %cst_62 = arith.constant 3.200000e+01 : f32
    %191 = vector.broadcast %cst_62 : f32 to vector<16x1xf32>
    %192 = arith.divf %190, %191 : vector<16x1xf32>
    %193 = vector.broadcast %183 : vector<16x1xf32> to vector<16x32xf32>
    %194 = arith.subf %179, %193 : vector<16x32xf32>
    %cst_63 = arith.constant 9.99999974E-6 : f32
    %195 = vector.broadcast %cst_63 : f32 to vector<16x1xf32>
    %196 = arith.addf %192, %195 : vector<16x1xf32>
    %197 = math.rsqrt %196 : vector<16x1xf32>
    %198 = vector.broadcast %197 : vector<16x1xf32> to vector<16x32xf32>
    %199 = arith.mulf %194, %198 : vector<16x32xf32>
    %200 = vector.broadcast %59 : vector<1x32xf32> to vector<16x32xf32>
    %201 = arith.mulf %199, %200 : vector<16x32xf32>
    %202 = vector.broadcast %60 : vector<1x32xf32> to vector<16x32xf32>
    %203 = arith.addf %201, %202 : vector<16x32xf32>
    %c0_64 = arith.constant 0 : index
    %c0_65 = arith.constant 0 : index
    %c0_66 = arith.constant 0 : index
    %204 = vector.load %arg9[%c0_64, %c0_65, %c0_66] : memref<2x32x64xbf16, #tpu.memory_space<vmem>>, vector<1x32x64xbf16>
    %205 = vector.shape_cast %204 : vector<1x32x64xbf16> to vector<32x64xbf16>
    %206 = arith.truncf %203 : vector<16x32xf32> to vector<16x32xbf16>
    %cst_67 = arith.constant dense<0.000000e+00> : vector<16x64xf32>
    %207 = tpu.matmul %206, %205, %cst_67 {dimension_numbers = #tpu.dot_dimension_numbers<[1], [0], [0], [1], [0, 0, 1, 1], [], []>} : vector<16x32xbf16>, vector<32x64xbf16>, vector<16x64xf32> -> vector<16x64xf32>
    %208 = vector.broadcast %61 : vector<1x64xf32> to vector<16x64xf32>
    %209 = arith.addf %207, %208 : vector<16x64xf32>
    %cst_68 = arith.constant 5.000000e-01 : f32
    %210 = vector.broadcast %cst_68 : f32 to vector<16x64xf32>
    %211 = arith.mulf %210, %209 : vector<16x64xf32>
    %cst_69 = arith.constant 4.471500e-02 : f32
    %212 = vector.broadcast %cst_69 : f32 to vector<16x64xf32>
    %213 = arith.mulf %212, %209 : vector<16x64xf32>
    %214 = arith.mulf %213, %209 : vector<16x64xf32>
    %215 = arith.mulf %214, %209 : vector<16x64xf32>
    %216 = arith.addf %209, %215 : vector<16x64xf32>
    %cst_70 = arith.constant 0.797884583 : f32
    %217 = vector.broadcast %cst_70 : f32 to vector<16x64xf32>
    %218 = arith.mulf %217, %216 : vector<16x64xf32>
    %219 = math.tanh %218 : vector<16x64xf32>
    %cst_71 = arith.constant 1.000000e+00 : f32
    %220 = vector.broadcast %cst_71 : f32 to vector<16x64xf32>
    %221 = arith.addf %220, %219 : vector<16x64xf32>
    %222 = arith.mulf %211, %221 : vector<16x64xf32>
    %c0_72 = arith.constant 0 : index
    %c0_73 = arith.constant 0 : index
    %c0_74 = arith.constant 0 : index
    %223 = vector.load %arg10[%c0_72, %c0_73, %c0_74] : memref<2x64x32xbf16, #tpu.memory_space<vmem>>, vector<1x64x32xbf16>
    %224 = vector.shape_cast %223 : vector<1x64x32xbf16> to vector<64x32xbf16>
    %225 = arith.truncf %222 : vector<16x64xf32> to vector<16x64xbf16>
    %cst_75 = arith.constant dense<0.000000e+00> : vector<16x32xf32>
    %226 = tpu.matmul %225, %224, %cst_75 {dimension_numbers = #tpu.dot_dimension_numbers<[1], [0], [0], [1], [0, 0, 1, 1], [], []>} : vector<16x64xbf16>, vector<64x32xbf16>, vector<16x32xf32> -> vector<16x32xf32>
    %227 = arith.addf %179, %226 : vector<16x32xf32>
    %228 = vector.broadcast %62 : vector<1x32xf32> to vector<16x32xf32>
    %229 = arith.addf %227, %228 : vector<16x32xf32>
    %c1 = arith.constant 1 : index
    %c0_76 = arith.constant 0 : index
    %c0_77 = arith.constant 0 : index
    %230 = vector.load %arg12[%c1, %c0_76, %c0_77] : memref<2x8x128xf32, #tpu.memory_space<vmem>>, vector<1x8x128xf32>
    %231 = vector.shape_cast %230 : vector<1x8x128xf32> to vector<8x128xf32>
    %232 = vector.extract_strided_slice %231 {offsets = [0, 0], sizes = [1, 32], strides = [1, 1]} : vector<8x128xf32> to vector<1x32xf32>
    %233 = vector.extract_strided_slice %231 {offsets = [1, 0], sizes = [1, 32], strides = [1, 1]} : vector<8x128xf32> to vector<1x32xf32>
    %234 = vector.extract_strided_slice %231 {offsets = [2, 0], sizes = [1, 96], strides = [1, 1]} : vector<8x128xf32> to vector<1x96xf32>
    %235 = vector.extract_strided_slice %231 {offsets = [3, 0], sizes = [1, 32], strides = [1, 1]} : vector<8x128xf32> to vector<1x32xf32>
    %236 = vector.extract_strided_slice %231 {offsets = [4, 0], sizes = [1, 32], strides = [1, 1]} : vector<8x128xf32> to vector<1x32xf32>
    %237 = vector.extract_strided_slice %231 {offsets = [5, 0], sizes = [1, 32], strides = [1, 1]} : vector<8x128xf32> to vector<1x32xf32>
    %238 = vector.extract_strided_slice %231 {offsets = [6, 0], sizes = [1, 64], strides = [1, 1]} : vector<8x128xf32> to vector<1x64xf32>
    %239 = vector.extract_strided_slice %231 {offsets = [7, 0], sizes = [1, 32], strides = [1, 1]} : vector<8x128xf32> to vector<1x32xf32>
    %cst_78 = arith.constant dense<0.000000e+00> : vector<16xf32>
    %240 = vector.multi_reduction <add>, %229, %cst_78 [1] : vector<16x32xf32> to vector<16xf32>
    %241 = vector.shape_cast %240 : vector<16xf32> to vector<16x1xf32>
    %cst_79 = arith.constant 3.200000e+01 : f32
    %242 = vector.broadcast %cst_79 : f32 to vector<16x1xf32>
    %243 = arith.divf %241, %242 : vector<16x1xf32>
    %244 = vector.broadcast %243 : vector<16x1xf32> to vector<16x32xf32>
    %245 = arith.subf %229, %244 : vector<16x32xf32>
    %246 = vector.broadcast %243 : vector<16x1xf32> to vector<16x32xf32>
    %247 = arith.subf %229, %246 : vector<16x32xf32>
    %248 = arith.mulf %245, %247 : vector<16x32xf32>
    %cst_80 = arith.constant dense<0.000000e+00> : vector<16xf32>
    %249 = vector.multi_reduction <add>, %248, %cst_80 [1] : vector<16x32xf32> to vector<16xf32>
    %250 = vector.shape_cast %249 : vector<16xf32> to vector<16x1xf32>
    %cst_81 = arith.constant 3.200000e+01 : f32
    %251 = vector.broadcast %cst_81 : f32 to vector<16x1xf32>
    %252 = arith.divf %250, %251 : vector<16x1xf32>
    %253 = vector.broadcast %243 : vector<16x1xf32> to vector<16x32xf32>
    %254 = arith.subf %229, %253 : vector<16x32xf32>
    %cst_82 = arith.constant 9.99999974E-6 : f32
    %255 = vector.broadcast %cst_82 : f32 to vector<16x1xf32>
    %256 = arith.addf %252, %255 : vector<16x1xf32>
    %257 = math.rsqrt %256 : vector<16x1xf32>
    %258 = vector.broadcast %257 : vector<16x1xf32> to vector<16x32xf32>
    %259 = arith.mulf %254, %258 : vector<16x32xf32>
    %260 = vector.broadcast %232 : vector<1x32xf32> to vector<16x32xf32>
    %261 = arith.mulf %259, %260 : vector<16x32xf32>
    %262 = vector.broadcast %233 : vector<1x32xf32> to vector<16x32xf32>
    %263 = arith.addf %261, %262 : vector<16x32xf32>
    %c1_83 = arith.constant 1 : index
    %c0_84 = arith.constant 0 : index
    %c0_85 = arith.constant 0 : index
    %264 = vector.load %arg7[%c1_83, %c0_84, %c0_85] : memref<2x32x96xbf16, #tpu.memory_space<vmem>>, vector<1x32x96xbf16>
    %265 = vector.shape_cast %264 : vector<1x32x96xbf16> to vector<32x96xbf16>
    %266 = arith.truncf %263 : vector<16x32xf32> to vector<16x32xbf16>
    %cst_86 = arith.constant dense<0.000000e+00> : vector<16x96xf32>
    %267 = tpu.matmul %266, %265, %cst_86 {dimension_numbers = #tpu.dot_dimension_numbers<[1], [0], [0], [1], [0, 0, 1, 1], [], []>} : vector<16x32xbf16>, vector<32x96xbf16>, vector<16x96xf32> -> vector<16x96xf32>
    %268 = vector.broadcast %234 : vector<1x96xf32> to vector<16x96xf32>
    %269 = arith.addf %267, %268 : vector<16x96xf32>
    %270 = arith.truncf %269 : vector<16x96xf32> to vector<16x96xbf16>
    %c1_87 = arith.constant 1 : index
    %c0_88 = arith.constant 0 : index
    %c0_89 = arith.constant 0 : index
    %271 = vector.load %arg8[%c1_87, %c0_88, %c0_89] : memref<2x32x32xbf16, #tpu.memory_space<vmem>>, vector<1x32x32xbf16>
    %272 = vector.shape_cast %271 : vector<1x32x32xbf16> to vector<32x32xbf16>
    %cst_90 = arith.constant 0.000000e+00 : f32
    %273 = vector.broadcast %cst_90 : f32 to vector<16x32xf32>
    %274 = vector.extract_strided_slice %270 {offsets = [0, 0], sizes = [16, 8], strides = [1, 1]} : vector<16x96xbf16> to vector<16x8xbf16>
    %275 = vector.extract_strided_slice %270 {offsets = [0, 32], sizes = [16, 8], strides = [1, 1]} : vector<16x96xbf16> to vector<16x8xbf16>
    %276 = vector.extract_strided_slice %270 {offsets = [0, 64], sizes = [16, 8], strides = [1, 1]} : vector<16x96xbf16> to vector<16x8xbf16>
    %cst_91 = arith.constant dense<0.000000e+00> : vector<16x16xf32>
    %277 = tpu.matmul %274, %275, %cst_91 {dimension_numbers = #tpu.dot_dimension_numbers<[1], [1], [0], [0], [0, 0, 1, 0], [], []>} : vector<16x8xbf16>, vector<16x8xbf16>, vector<16x16xf32> -> vector<16x16xf32>
    %cst_92 = arith.constant dense<0xFF800000> : vector<16xf32>
    %278 = vector.multi_reduction <maximumf>, %277, %cst_92 [1] : vector<16x16xf32> to vector<16xf32>
    %279 = vector.shape_cast %278 : vector<16xf32> to vector<16x1xf32>
    %280 = vector.broadcast %279 : vector<16x1xf32> to vector<16x16xf32>
    %281 = arith.subf %277, %280 : vector<16x16xf32>
    %282 = math.exp %281 : vector<16x16xf32>
    %cst_93 = arith.constant dense<0.000000e+00> : vector<16xf32>
    %283 = vector.multi_reduction <add>, %282, %cst_93 [1] : vector<16x16xf32> to vector<16xf32>
    %284 = vector.shape_cast %283 : vector<16xf32> to vector<16x1xf32>
    %285 = tpu.reciprocal %284 {approx = true} : vector<16x1xf32> -> vector<16x1xf32>
    %286 = vector.broadcast %285 : vector<16x1xf32> to vector<16x16xf32>
    %287 = arith.mulf %282, %286 : vector<16x16xf32>
    %288 = arith.truncf %287 : vector<16x16xf32> to vector<16x16xbf16>
    %cst_94 = arith.constant dense<0.000000e+00> : vector<16x8xf32>
    %289 = tpu.matmul %288, %276, %cst_94 {dimension_numbers = #tpu.dot_dimension_numbers<[1], [0], [0], [1], [0, 0, 1, 1], [], []>} : vector<16x16xbf16>, vector<16x8xbf16>, vector<16x8xf32> -> vector<16x8xf32>
    %290 = arith.truncf %289 : vector<16x8xf32> to vector<16x8xbf16>
    %291 = vector.extract_strided_slice %272 {offsets = [0, 0], sizes = [8, 32], strides = [1, 1]} : vector<32x32xbf16> to vector<8x32xbf16>
    %cst_95 = arith.constant dense<0.000000e+00> : vector<16x32xf32>
    %292 = tpu.matmul %290, %291, %cst_95 {dimension_numbers = #tpu.dot_dimension_numbers<[1], [0], [0], [1], [0, 0, 1, 1], [], []>} : vector<16x8xbf16>, vector<8x32xbf16>, vector<16x32xf32> -> vector<16x32xf32>
    %293 = arith.addf %273, %292 : vector<16x32xf32>
    %294 = vector.extract_strided_slice %270 {offsets = [0, 8], sizes = [16, 8], strides = [1, 1]} : vector<16x96xbf16> to vector<16x8xbf16>
    %295 = vector.extract_strided_slice %270 {offsets = [0, 40], sizes = [16, 8], strides = [1, 1]} : vector<16x96xbf16> to vector<16x8xbf16>
    %296 = vector.extract_strided_slice %270 {offsets = [0, 72], sizes = [16, 8], strides = [1, 1]} : vector<16x96xbf16> to vector<16x8xbf16>
    %cst_96 = arith.constant dense<0.000000e+00> : vector<16x16xf32>
    %297 = tpu.matmul %294, %295, %cst_96 {dimension_numbers = #tpu.dot_dimension_numbers<[1], [1], [0], [0], [0, 0, 1, 0], [], []>} : vector<16x8xbf16>, vector<16x8xbf16>, vector<16x16xf32> -> vector<16x16xf32>
    %cst_97 = arith.constant dense<0xFF800000> : vector<16xf32>
    %298 = vector.multi_reduction <maximumf>, %297, %cst_97 [1] : vector<16x16xf32> to vector<16xf32>
    %299 = vector.shape_cast %298 : vector<16xf32> to vector<16x1xf32>
    %300 = vector.broadcast %299 : vector<16x1xf32> to vector<16x16xf32>
    %301 = arith.subf %297, %300 : vector<16x16xf32>
    %302 = math.exp %301 : vector<16x16xf32>
    %cst_98 = arith.constant dense<0.000000e+00> : vector<16xf32>
    %303 = vector.multi_reduction <add>, %302, %cst_98 [1] : vector<16x16xf32> to vector<16xf32>
    %304 = vector.shape_cast %303 : vector<16xf32> to vector<16x1xf32>
    %305 = tpu.reciprocal %304 {approx = true} : vector<16x1xf32> -> vector<16x1xf32>
    %306 = vector.broadcast %305 : vector<16x1xf32> to vector<16x16xf32>
    %307 = arith.mulf %302, %306 : vector<16x16xf32>
    %308 = arith.truncf %307 : vector<16x16xf32> to vector<16x16xbf16>
    %cst_99 = arith.constant dense<0.000000e+00> : vector<16x8xf32>
    %309 = tpu.matmul %308, %296, %cst_99 {dimension_numbers = #tpu.dot_dimension_numbers<[1], [0], [0], [1], [0, 0, 1, 1], [], []>} : vector<16x16xbf16>, vector<16x8xbf16>, vector<16x8xf32> -> vector<16x8xf32>
    %310 = arith.truncf %309 : vector<16x8xf32> to vector<16x8xbf16>
    %311 = vector.extract_strided_slice %272 {offsets = [8, 0], sizes = [8, 32], strides = [1, 1]} : vector<32x32xbf16> to vector<8x32xbf16>
    %cst_100 = arith.constant dense<0.000000e+00> : vector<16x32xf32>
    %312 = tpu.matmul %310, %311, %cst_100 {dimension_numbers = #tpu.dot_dimension_numbers<[1], [0], [0], [1], [0, 0, 1, 1], [], []>} : vector<16x8xbf16>, vector<8x32xbf16>, vector<16x32xf32> -> vector<16x32xf32>
    %313 = arith.addf %293, %312 : vector<16x32xf32>
    %314 = vector.extract_strided_slice %270 {offsets = [0, 16], sizes = [16, 8], strides = [1, 1]} : vector<16x96xbf16> to vector<16x8xbf16>
    %315 = vector.extract_strided_slice %270 {offsets = [0, 48], sizes = [16, 8], strides = [1, 1]} : vector<16x96xbf16> to vector<16x8xbf16>
    %316 = vector.extract_strided_slice %270 {offsets = [0, 80], sizes = [16, 8], strides = [1, 1]} : vector<16x96xbf16> to vector<16x8xbf16>
    %cst_101 = arith.constant dense<0.000000e+00> : vector<16x16xf32>
    %317 = tpu.matmul %314, %315, %cst_101 {dimension_numbers = #tpu.dot_dimension_numbers<[1], [1], [0], [0], [0, 0, 1, 0], [], []>} : vector<16x8xbf16>, vector<16x8xbf16>, vector<16x16xf32> -> vector<16x16xf32>
    %cst_102 = arith.constant dense<0xFF800000> : vector<16xf32>
    %318 = vector.multi_reduction <maximumf>, %317, %cst_102 [1] : vector<16x16xf32> to vector<16xf32>
    %319 = vector.shape_cast %318 : vector<16xf32> to vector<16x1xf32>
    %320 = vector.broadcast %319 : vector<16x1xf32> to vector<16x16xf32>
    %321 = arith.subf %317, %320 : vector<16x16xf32>
    %322 = math.exp %321 : vector<16x16xf32>
    %cst_103 = arith.constant dense<0.000000e+00> : vector<16xf32>
    %323 = vector.multi_reduction <add>, %322, %cst_103 [1] : vector<16x16xf32> to vector<16xf32>
    %324 = vector.shape_cast %323 : vector<16xf32> to vector<16x1xf32>
    %325 = tpu.reciprocal %324 {approx = true} : vector<16x1xf32> -> vector<16x1xf32>
    %326 = vector.broadcast %325 : vector<16x1xf32> to vector<16x16xf32>
    %327 = arith.mulf %322, %326 : vector<16x16xf32>
    %328 = arith.truncf %327 : vector<16x16xf32> to vector<16x16xbf16>
    %cst_104 = arith.constant dense<0.000000e+00> : vector<16x8xf32>
    %329 = tpu.matmul %328, %316, %cst_104 {dimension_numbers = #tpu.dot_dimension_numbers<[1], [0], [0], [1], [0, 0, 1, 1], [], []>} : vector<16x16xbf16>, vector<16x8xbf16>, vector<16x8xf32> -> vector<16x8xf32>
    %330 = arith.truncf %329 : vector<16x8xf32> to vector<16x8xbf16>
    %331 = vector.extract_strided_slice %272 {offsets = [16, 0], sizes = [8, 32], strides = [1, 1]} : vector<32x32xbf16> to vector<8x32xbf16>
    %cst_105 = arith.constant dense<0.000000e+00> : vector<16x32xf32>
    %332 = tpu.matmul %330, %331, %cst_105 {dimension_numbers = #tpu.dot_dimension_numbers<[1], [0], [0], [1], [0, 0, 1, 1], [], []>} : vector<16x8xbf16>, vector<8x32xbf16>, vector<16x32xf32> -> vector<16x32xf32>
    %333 = arith.addf %313, %332 : vector<16x32xf32>
    %334 = vector.extract_strided_slice %270 {offsets = [0, 24], sizes = [16, 8], strides = [1, 1]} : vector<16x96xbf16> to vector<16x8xbf16>
    %335 = vector.extract_strided_slice %270 {offsets = [0, 56], sizes = [16, 8], strides = [1, 1]} : vector<16x96xbf16> to vector<16x8xbf16>
    %336 = vector.extract_strided_slice %270 {offsets = [0, 88], sizes = [16, 8], strides = [1, 1]} : vector<16x96xbf16> to vector<16x8xbf16>
    %cst_106 = arith.constant dense<0.000000e+00> : vector<16x16xf32>
    %337 = tpu.matmul %334, %335, %cst_106 {dimension_numbers = #tpu.dot_dimension_numbers<[1], [1], [0], [0], [0, 0, 1, 0], [], []>} : vector<16x8xbf16>, vector<16x8xbf16>, vector<16x16xf32> -> vector<16x16xf32>
    %cst_107 = arith.constant dense<0xFF800000> : vector<16xf32>
    %338 = vector.multi_reduction <maximumf>, %337, %cst_107 [1] : vector<16x16xf32> to vector<16xf32>
    %339 = vector.shape_cast %338 : vector<16xf32> to vector<16x1xf32>
    %340 = vector.broadcast %339 : vector<16x1xf32> to vector<16x16xf32>
    %341 = arith.subf %337, %340 : vector<16x16xf32>
    %342 = math.exp %341 : vector<16x16xf32>
    %cst_108 = arith.constant dense<0.000000e+00> : vector<16xf32>
    %343 = vector.multi_reduction <add>, %342, %cst_108 [1] : vector<16x16xf32> to vector<16xf32>
    %344 = vector.shape_cast %343 : vector<16xf32> to vector<16x1xf32>
    %345 = tpu.reciprocal %344 {approx = true} : vector<16x1xf32> -> vector<16x1xf32>
    %346 = vector.broadcast %345 : vector<16x1xf32> to vector<16x16xf32>
    %347 = arith.mulf %342, %346 : vector<16x16xf32>
    %348 = arith.truncf %347 : vector<16x16xf32> to vector<16x16xbf16>
    %cst_109 = arith.constant dense<0.000000e+00> : vector<16x8xf32>
    %349 = tpu.matmul %348, %336, %cst_109 {dimension_numbers = #tpu.dot_dimension_numbers<[1], [0], [0], [1], [0, 0, 1, 1], [], []>} : vector<16x16xbf16>, vector<16x8xbf16>, vector<16x8xf32> -> vector<16x8xf32>
    %350 = arith.truncf %349 : vector<16x8xf32> to vector<16x8xbf16>
    %351 = vector.extract_strided_slice %272 {offsets = [24, 0], sizes = [8, 32], strides = [1, 1]} : vector<32x32xbf16> to vector<8x32xbf16>
    %cst_110 = arith.constant dense<0.000000e+00> : vector<16x32xf32>
    %352 = tpu.matmul %350, %351, %cst_110 {dimension_numbers = #tpu.dot_dimension_numbers<[1], [0], [0], [1], [0, 0, 1, 1], [], []>} : vector<16x8xbf16>, vector<8x32xbf16>, vector<16x32xf32> -> vector<16x32xf32>
    %353 = arith.addf %333, %352 : vector<16x32xf32>
    %354 = arith.addf %229, %353 : vector<16x32xf32>
    %355 = vector.broadcast %235 : vector<1x32xf32> to vector<16x32xf32>
    %356 = arith.addf %354, %355 : vector<16x32xf32>
    %cst_111 = arith.constant dense<0.000000e+00> : vector<16xf32>
    %357 = vector.multi_reduction <add>, %356, %cst_111 [1] : vector<16x32xf32> to vector<16xf32>
    %358 = vector.shape_cast %357 : vector<16xf32> to vector<16x1xf32>
    %cst_112 = arith.constant 3.200000e+01 : f32
    %359 = vector.broadcast %cst_112 : f32 to vector<16x1xf32>
    %360 = arith.divf %358, %359 : vector<16x1xf32>
    %361 = vector.broadcast %360 : vector<16x1xf32> to vector<16x32xf32>
    %362 = arith.subf %356, %361 : vector<16x32xf32>
    %363 = vector.broadcast %360 : vector<16x1xf32> to vector<16x32xf32>
    %364 = arith.subf %356, %363 : vector<16x32xf32>
    %365 = arith.mulf %362, %364 : vector<16x32xf32>
    %cst_113 = arith.constant dense<0.000000e+00> : vector<16xf32>
    %366 = vector.multi_reduction <add>, %365, %cst_113 [1] : vector<16x32xf32> to vector<16xf32>
    %367 = vector.shape_cast %366 : vector<16xf32> to vector<16x1xf32>
    %cst_114 = arith.constant 3.200000e+01 : f32
    %368 = vector.broadcast %cst_114 : f32 to vector<16x1xf32>
    %369 = arith.divf %367, %368 : vector<16x1xf32>
    %370 = vector.broadcast %360 : vector<16x1xf32> to vector<16x32xf32>
    %371 = arith.subf %356, %370 : vector<16x32xf32>
    %cst_115 = arith.constant 9.99999974E-6 : f32
    %372 = vector.broadcast %cst_115 : f32 to vector<16x1xf32>
    %373 = arith.addf %369, %372 : vector<16x1xf32>
    %374 = math.rsqrt %373 : vector<16x1xf32>
    %375 = vector.broadcast %374 : vector<16x1xf32> to vector<16x32xf32>
    %376 = arith.mulf %371, %375 : vector<16x32xf32>
    %377 = vector.broadcast %236 : vector<1x32xf32> to vector<16x32xf32>
    %378 = arith.mulf %376, %377 : vector<16x32xf32>
    %379 = vector.broadcast %237 : vector<1x32xf32> to vector<16x32xf32>
    %380 = arith.addf %378, %379 : vector<16x32xf32>
    %c1_116 = arith.constant 1 : index
    %c0_117 = arith.constant 0 : index
    %c0_118 = arith.constant 0 : index
    %381 = vector.load %arg9[%c1_116, %c0_117, %c0_118] : memref<2x32x64xbf16, #tpu.memory_space<vmem>>, vector<1x32x64xbf16>
    %382 = vector.shape_cast %381 : vector<1x32x64xbf16> to vector<32x64xbf16>
    %383 = arith.truncf %380 : vector<16x32xf32> to vector<16x32xbf16>
    %cst_119 = arith.constant dense<0.000000e+00> : vector<16x64xf32>
    %384 = tpu.matmul %383, %382, %cst_119 {dimension_numbers = #tpu.dot_dimension_numbers<[1], [0], [0], [1], [0, 0, 1, 1], [], []>} : vector<16x32xbf16>, vector<32x64xbf16>, vector<16x64xf32> -> vector<16x64xf32>
    %385 = vector.broadcast %238 : vector<1x64xf32> to vector<16x64xf32>
    %386 = arith.addf %384, %385 : vector<16x64xf32>
    %cst_120 = arith.constant 5.000000e-01 : f32
    %387 = vector.broadcast %cst_120 : f32 to vector<16x64xf32>
    %388 = arith.mulf %387, %386 : vector<16x64xf32>
    %cst_121 = arith.constant 4.471500e-02 : f32
    %389 = vector.broadcast %cst_121 : f32 to vector<16x64xf32>
    %390 = arith.mulf %389, %386 : vector<16x64xf32>
    %391 = arith.mulf %390, %386 : vector<16x64xf32>
    %392 = arith.mulf %391, %386 : vector<16x64xf32>
    %393 = arith.addf %386, %392 : vector<16x64xf32>
    %cst_122 = arith.constant 0.797884583 : f32
    %394 = vector.broadcast %cst_122 : f32 to vector<16x64xf32>
    %395 = arith.mulf %394, %393 : vector<16x64xf32>
    %396 = math.tanh %395 : vector<16x64xf32>
    %cst_123 = arith.constant 1.000000e+00 : f32
    %397 = vector.broadcast %cst_123 : f32 to vector<16x64xf32>
    %398 = arith.addf %397, %396 : vector<16x64xf32>
    %399 = arith.mulf %388, %398 : vector<16x64xf32>
    %c1_124 = arith.constant 1 : index
    %c0_125 = arith.constant 0 : index
    %c0_126 = arith.constant 0 : index
    %400 = vector.load %arg10[%c1_124, %c0_125, %c0_126] : memref<2x64x32xbf16, #tpu.memory_space<vmem>>, vector<1x64x32xbf16>
    %401 = vector.shape_cast %400 : vector<1x64x32xbf16> to vector<64x32xbf16>
    %402 = arith.truncf %399 : vector<16x64xf32> to vector<16x64xbf16>
    %cst_127 = arith.constant dense<0.000000e+00> : vector<16x32xf32>
    %403 = tpu.matmul %402, %401, %cst_127 {dimension_numbers = #tpu.dot_dimension_numbers<[1], [0], [0], [1], [0, 0, 1, 1], [], []>} : vector<16x64xbf16>, vector<64x32xbf16>, vector<16x32xf32> -> vector<16x32xf32>
    %404 = arith.addf %356, %403 : vector<16x32xf32>
    %405 = vector.broadcast %239 : vector<1x32xf32> to vector<16x32xf32>
    %406 = arith.addf %404, %405 : vector<16x32xf32>
    %cst_128 = arith.constant dense<0.000000e+00> : vector<16xf32>
    %407 = vector.multi_reduction <add>, %406, %cst_128 [1] : vector<16x32xf32> to vector<16xf32>
    %408 = vector.shape_cast %407 : vector<16xf32> to vector<16x1xf32>
    %cst_129 = arith.constant 3.200000e+01 : f32
    %409 = vector.broadcast %cst_129 : f32 to vector<16x1xf32>
    %410 = arith.divf %408, %409 : vector<16x1xf32>
    %411 = vector.broadcast %410 : vector<16x1xf32> to vector<16x32xf32>
    %412 = arith.subf %406, %411 : vector<16x32xf32>
    %413 = vector.broadcast %410 : vector<16x1xf32> to vector<16x32xf32>
    %414 = arith.subf %406, %413 : vector<16x32xf32>
    %415 = arith.mulf %412, %414 : vector<16x32xf32>
    %cst_130 = arith.constant dense<0.000000e+00> : vector<16xf32>
    %416 = vector.multi_reduction <add>, %415, %cst_130 [1] : vector<16x32xf32> to vector<16xf32>
    %417 = vector.shape_cast %416 : vector<16xf32> to vector<16x1xf32>
    %cst_131 = arith.constant 3.200000e+01 : f32
    %418 = vector.broadcast %cst_131 : f32 to vector<16x1xf32>
    %419 = arith.divf %417, %418 : vector<16x1xf32>
    %420 = vector.broadcast %410 : vector<16x1xf32> to vector<16x32xf32>
    %421 = arith.subf %406, %420 : vector<16x32xf32>
    %cst_132 = arith.constant 9.99999974E-6 : f32
    %422 = vector.broadcast %cst_132 : f32 to vector<16x1xf32>
    %423 = arith.addf %419, %422 : vector<16x1xf32>
    %424 = math.rsqrt %423 : vector<16x1xf32>
    %425 = vector.broadcast %424 : vector<16x1xf32> to vector<16x32xf32>
    %426 = arith.mulf %421, %425 : vector<16x32xf32>
    %427 = vector.broadcast %2 : vector<1x32xf32> to vector<16x32xf32>
    %428 = arith.mulf %426, %427 : vector<16x32xf32>
    %429 = vector.broadcast %3 : vector<1x32xf32> to vector<16x32xf32>
    %430 = arith.addf %428, %429 : vector<16x32xf32>
    %c0_133 = arith.constant 0 : index
    %c0_134 = arith.constant 0 : index
    %431 = vector.load %arg11[%c0_133, %c0_134] : memref<32x128xbf16, #tpu.memory_space<vmem>>, vector<32x128xbf16>
    %432 = arith.truncf %430 : vector<16x32xf32> to vector<16x32xbf16>
    %cst_135 = arith.constant dense<0.000000e+00> : vector<16x128xf32>
    %433 = tpu.matmul %432, %431, %cst_135 {dimension_numbers = #tpu.dot_dimension_numbers<[1], [0], [0], [1], [0, 0, 1, 1], [], []>} : vector<16x32xbf16>, vector<32x128xbf16>, vector<16x128xf32> -> vector<16x128xf32>
    %434 = vector.broadcast %4 : vector<1x128xf32> to vector<16x128xf32>
    %435 = arith.addf %433, %434 : vector<16x128xf32>
    %c0_136 = arith.constant 0 : index
    %c0_137 = arith.constant 0 : index
    %436 = vector.load %arg14[%c0_136, %c0_137] : memref<16x128xf32, #tpu.memory_space<vmem>>, vector<16x128xf32>
    tpu.vector_store %arg14[%c0_136, %c0_137], %435 {strides = array<i32>} : memref<16x128xf32, #tpu.memory_space<vmem>>, vector<16x128xf32>,
    return
  }
  func.func @transform_0(%arg0: i32) -> (i32, i32) {
    %c0_i32 = arith.constant 0 : i32
    %c0_i32_0 = arith.constant 0 : i32
    return %arg0, %c0_i32 : i32, i32
  }
  func.func @transform_1(%arg0: i32) -> (i32, i32) {
    %c0_i32 = arith.constant 0 : i32
    %c0_i32_0 = arith.constant 0 : i32
    return %arg0, %c0_i32 : i32, i32
  }
  func.func @transform_2(%arg0: i32) -> (i32, i32) {
    %c0_i32 = arith.constant 0 : i32
    %c0_i32_0 = arith.constant 0 : i32
    %c0_i32_1 = arith.constant 0 : i32
    return %c0_i32, %c0_i32_0 : i32, i32
  }
  func.func @transform_3(%arg0: i32) -> (i32, i32) {
    %c0_i32 = arith.constant 0 : i32
    %c0_i32_0 = arith.constant 0 : i32
    %c0_i32_1 = arith.constant 0 : i32
    return %c0_i32, %c0_i32_0 : i32, i32
  }
  func.func @transform_4(%arg0: i32) -> (i32, i32) {
    %c0_i32 = arith.constant 0 : i32
    %c0_i32_0 = arith.constant 0 : i32
    %c0_i32_1 = arith.constant 0 : i32
    return %c0_i32, %c0_i32_0 : i32, i32
  }
  func.func @transform_5(%arg0: i32) -> (i32, i32) {
    %c0_i32 = arith.constant 0 : i32
    %c0_i32_0 = arith.constant 0 : i32
    %c0_i32_1 = arith.constant 0 : i32
    return %c0_i32, %c0_i32_0 : i32, i32
  }
  func.func @transform_6(%arg0: i32) -> (i32, i32, i32) {
    %c0_i32 = arith.constant 0 : i32
    %c0_i32_0 = arith.constant 0 : i32
    %c0_i32_1 = arith.constant 0 : i32
    %c0_i32_2 = arith.constant 0 : i32
    return %c0_i32, %c0_i32_0, %c0_i32_1 : i32, i32, i32
  }
  func.func @transform_7(%arg0: i32) -> (i32, i32, i32) {
    %c0_i32 = arith.constant 0 : i32
    %c0_i32_0 = arith.constant 0 : i32
    %c0_i32_1 = arith.constant 0 : i32
    %c0_i32_2 = arith.constant 0 : i32
    return %c0_i32, %c0_i32_0, %c0_i32_1 : i32, i32, i32
  }
  func.func @transform_8(%arg0: i32) -> (i32, i32, i32) {
    %c0_i32 = arith.constant 0 : i32
    %c0_i32_0 = arith.constant 0 : i32
    %c0_i32_1 = arith.constant 0 : i32
    %c0_i32_2 = arith.constant 0 : i32
    return %c0_i32, %c0_i32_0, %c0_i32_1 : i32, i32, i32
  }
  func.func @transform_9(%arg0: i32) -> (i32, i32, i32) {
    %c0_i32 = arith.constant 0 : i32
    %c0_i32_0 = arith.constant 0 : i32
    %c0_i32_1 = arith.constant 0 : i32
    %c0_i32_2 = arith.constant 0 : i32
    return %c0_i32, %c0_i32_0, %c0_i32_1 : i32, i32, i32
  }
  func.func @transform_10(%arg0: i32) -> (i32, i32) {
    %c0_i32 = arith.constant 0 : i32
    %c0_i32_0 = arith.constant 0 : i32
    %c0_i32_1 = arith.constant 0 : i32
    return %c0_i32, %c0_i32_0 : i32, i32
  }
  func.func @transform_11(%arg0: i32) -> (i32, i32, i32) {
    %c0_i32 = arith.constant 0 : i32
    %c0_i32_0 = arith.constant 0 : i32
    %c0_i32_1 = arith.constant 0 : i32
    %c0_i32_2 = arith.constant 0 : i32
    return %c0_i32, %c0_i32_0, %c0_i32_1 : i32, i32, i32
  }
  func.func @transform_12(%arg0: i32) -> (i32, i32) {
    %c0_i32 = arith.constant 0 : i32
    %c0_i32_0 = arith.constant 0 : i32
    %c0_i32_1 = arith.constant 0 : i32
    return %c0_i32, %c0_i32_0 : i32, i32
  }
  func.func @transform_13(%arg0: i32) -> (i32, i32) {
    %c0_i32 = arith.constant 0 : i32
    %c0_i32_0 = arith.constant 0 : i32
    return %arg0, %c0_i32 : i32, i32
  }
  func.func @transform_14(%arg0: i32) -> (i32, i32) {
    %c0_i32 = arith.constant 0 : i32
    %c0_i32_0 = arith.constant 0 : i32
    return %arg0, %c0_i32 : i32, i32
  }
}

</mosaic_0001>

<bundles_post_ra>
// kernel: maskgit_forward.3
= control target key start
LH: loop header
LB: loop body
LE: loop exit
PB: predicated region body
PF: predicated region fallthrough
CT: control target
= control target key end

     0   :  { %s3345_s0 = inlined_call_operand.vmem [shape: f32[32,48], index: 0, kind: input, shape index: {}]   ;;  %s3346_s1 = inlined_call_operand.vmem [shape: s32[32,1], index: 1, kind: input, shape index: {}]   ;;  %s3347_s2 = inlined_call_operand.vmem [shape: f32[48,32], index: 2, kind: input, shape index: {}]   ;;  %s3348_s3 = inlined_call_operand.vmem [shape: f32[64,32], index: 3, kind: input, shape index: {}]   ;;  %s3349_s4 = inlined_call_operand.vmem [shape: bf16[128,32], index: 4, kind: input, shape index: {}]   ;;  %s3350_s5 = inlined_call_operand.vmem [shape: f32[16,32], index: 5, kind: input, shape index: {}]   ;;  %s3351_s6 = inlined_call_operand.vmem [shape: bf16[2,32,96], index: 6, kind: input, shape index: {}]   ;;  %s3352_s7 = inlined_call_operand.vmem [shape: bf16[2,32,32], index: 7, kind: input, shape index: {}]   ;;  %s3353_s8 = inlined_call_operand.vmem [shape: bf16[2,32,64], index: 8, kind: input, shape index: {}]   ;;  %s3354_s9 = inlined_call_operand.vmem [shape: bf16[2,64,32], index: 9, kind: input, shape index: {}]   ;;  %s3355_s10 = inlined_call_operand.vmem [shape: bf16[32,128], index: 10, kind: input, shape index: {}]   ;;  %s3356_s11 = inlined_call_operand.vmem [shape: f32[2,8,128], index: 11, kind: input, shape index: {}]   ;;  %s3357_s12 = inlined_call_operand.vmem [shape: f32[4,128], index: 12, kind: input, shape index: {}]   ;;  %s3358_s13 = inlined_call_operand.hbm [shape: f32[32,128], index: 13, kind: output, shape index: {0}]   ;;  %s3359_s14 = inlined_call_operand.vmem [shape: s32[32,1], index: 14, kind: output, shape index: {1}]  }
   0x1   :  { %3372 = sst [smem:[#allocation8_spill]] %s3345_s0 }
   0x2   :  { %3373 = sst [smem:[#allocation9_spill]] %s3346_s1 }
   0x3   :  { %20 = vsyncpa [#allocation3], 0 }
   0x4   :  { %22 = vsyncpa [#allocation3 + $0x1], 0  ;;  %s2813_s29 = smov 0   ;;  %s2815_s30 = smov 0  }
   0x5   :  { %s2817_s15 = smov 0   ;;  %s2819_s16 = smov 0  }
   0x6 LB: > { %3374 = sst [smem:[#allocation5_spill]] %s2716_s15  ;;  %s2834_s17 = sadd.s32 4294967295, %s2720_s16   ;;  %s2720_s16 = sphi %s2819_s16, %s3390_s16   ;;  %s2716_s15 = sphi %s2817_s15, %s3392_s15   ;;  %s2712_s30 = sphi %s2815_s30, %s3394_s30   ;;  %s2708_s29 = sphi %s2813_s29, %s3393_s29  }
   0x7   : > { %s2290_s18 = sadd.s32 4294967294, %s2720_s16   ;;  %s2838_s19 = sadd.s32 1, %s2720_s16  }
   0x8   : > { %3375 = sst [smem:[#allocation6_spill]] %s2838_s19  ;;  %s318_s20 = sadd.s32 1, %s2716_s15 }
   0x9   : > { %s315_s21 = ssub.s32 %s2720_s16, %s2838_s19  ;;  %p328_p0 = scmp.ne.s32.totalorder %s2716_s15, %s2712_s30 }
   0xa   : > { %p316_p1 = scmp.eq.s32.totalorder %s315_s21, 0  ;;  %p329_p2 = scmp.eq.s32.totalorder %s2834_s17, 1 }
   0xb   : > { %p334_p3 = scmp.ne.s32.totalorder %s2712_s30, %s2708_s29  ;;  %p335_p4 = scmp.eq.s32.totalorder %s2290_s18, 1 }
   0xc   : > { %s2849_s22 = scalar_select %p316_p1, %s2716_s15, %s318_s20  }
   0xd   : > { %p2851_p5 = por %p329_p2, %p328_p0  ;;  %p2855_p6 = por %p335_p4, %p334_p3 }
   0xe   : > { %3376 = sst [smem:[#allocation7_spill]] %s2849_s22  ;;  %p2293_p7 = scmp.ge.s32.totalorder %s2720_s16, 1 }
   0xf   : > { %p430_p8 = scmp.lt.s32.totalorder %s2720_s16, 3 }
  0x11   : > { %p431_p9 = pnand %p2293_p7, %p430_p8 }
  0x12   : > { %s2295_s21 = sshll.u32 (!%p431_p9), %s2834_s17, 1  ;;  %s3379_s0 = sld [smem:[#allocation8_spill]] (!%p431_p9) }
  0x13   : > { %434 = sbr.rel (%p431_p9) target bundleno = 6024 (0x1788), region = 72  ;;  %p487_p10 = scmp.lt.s32.totalorder (!%p431_p9), %s2295_s21, 3 }
  0x14   : > { %s3380_s1 = sld [smem:[#allocation9_spill]] (!%p431_p9)  ;;  %s2726_s26 = smov (!%p431_p9), 64  }
  0x15   : > { %s3371_s28 = smov (!%p431_p9), 80   ;;  %s3370_s15 = smov (!%p431_p9), 72  }
  0x16   : > { %s3365_s22 = smov (!%p431_p9), 104   ;;  %s3363_s25 = smov (!%p431_p9), 56  }
  0x18   : > { %v514_v0 = vld [vmem:[%s3347_s2 + $0x28] sm:$0xff]  ;;  %v513_v1 = vld [vmem:[%s3347_s2 + $0x20] sm:$0xff]  ;;  %vm556_vm0 = vcmask 261120   ;;  %v512_v4 = vld [vmem:[%s3347_s2 + $0x18] sm:$0xff]  ;;  %s3396_s21 = smov (!%p487_p10, %s2295_s21), 3  ;;  %vm516_vm1 = vcmask 392192  }
  0x19   : > { %v546_v2 = vld [vmem:[%s3348_s3] sm:$0xff]  ;;  %533 = vmatpush.msra.mxu0 %v514_v0  ;;  %v547_v5 = vld [vmem:[%s3348_s3 + $0x8] sm:$0xff]  ;;  %v548_v6 = vld [vmem:[%s3348_s3 + $0x10] sm:$0xff]  ;;  %s2893_s27 = sshll.u32 %s3396_s21, 3  ;;  %vm687_vm2 = vcmask 523264   ;;  %v694_v0 = vlaneseq  ;;  %vm734_vm8 = vcmask 7168  }
  0x1a   : > { %v563_v3 = vmul.f32 %v546_v2, %v546_v2  ;;  %v565_v8 = vmul.f32 %v548_v6, %v548_v6  ;;  %v550_v9 = vld [vmem:[%s3348_s3 + $0x20] sm:$0xff]  ;;  %v511_v10 = vld [vmem:[%s3347_s2 + $0x10] sm:$0xff]  ;;  %v549_v11 = vld [vmem:[%s3348_s3 + $0x18] sm:$0xff]  ;;  %v564_v14 = vmul.f32 %v547_v5, %v547_v5  ;;  %s490_s19 = scalar_lea.vmem %s3379_s0, %s2893_s27  ;;  %s496_s18 = scalar_lea.vmem %s3380_s1, %s2893_s27 }
  0x1b   : > { %534 = vmatpush.msra.mxu0 %v513_v1  ;;  %v567_v12 = vmul.f32 %v550_v9, %v550_v9  ;;  %v553_v13 = vld [vmem:[%s3348_s3 + $0x38] sm:$0xff]  ;;  %v551_v16 = vld [vmem:[%s3348_s3 + $0x28] sm:$0xff]  ;;  %v566_v19 = vmul.f32 %v549_v11, %v549_v11  ;;  %v509_v20 = vld [vmem:[%s3347_s2] sm:$0xff]  ;;  %v2937_v1 = vand.u32 127, %v694_v0  ;;  %s503_s20 = scalar_lea.vmem %s3359_s14, %s2893_s27  ;;  %s2725_s21 = smov 96  }
  0x1c   : > { %v571_v7 = vsel %vm556_vm0, %v563_v3, 0.0  ;;  %v577_v15 = vsel %vm556_vm0, %v565_v8, 0.0  ;;  %2303 = vmatpush.xpose.msk.msra.mxu1 %vm556_vm0, %v553_v13  ;;  %v510_v17 = vld [vmem:[%s3347_s2 + $0x8] sm:$0xff]  ;;  %v568_v21 = vmul.f32 %v551_v16, %v551_v16  ;;  %v552_v22 = vld [vmem:[%s3348_s3 + $0x30] sm:$0xff]  ;;  %v574_v23 = vsel %vm556_vm0, %v564_v14, 0.0  ;;  %v507_v24 = vld [vmem:[%s490_s19] sm:$0xff] }
  0x1d   : > { %572 = vadd.xlane.f32.xlu0 %v571_v7  ;;  %535 = vmatpush.msra.mxu0 %v512_v4  ;;  %v583_v18 = vsel %vm556_vm0, %v567_v12, 0.0  ;;  %v580_v25 = vsel %vm556_vm0, %v566_v19, 0.0  ;;  %v569_v27 = vmul.f32 %v552_v22, %v552_v22  ;;  %v570_v28 = vmul.f32 %v553_v13, %v553_v13  ;;  %v508_v29 = vld [vmem:[%s490_s19 + $0x8] sm:$0xff]  ;;  %v506_v35 = vld [vmem:[%s3357_s12] sm:$0xf]  ;;  %s3368_s27 = smov 88  }
  0x1e   : > { %578 = vadd.xlane.f32.xlu1 %v577_v15  ;;  %584 = vadd.xlane.f32.xlu2 %v583_v18  ;;  %v586_v26 = vsel %vm556_vm0, %v568_v21, 0.0  ;;  %v515_v36 = vperm.slane %v506_v35, 0  ;;  %v2485_v21 = vld [vmem:[%s3349_s4 + $0x38] sm:$0xff]  ;;  %s3367_s19 = smov 40  }
  0x1f   : > { %536 = vmatpush.msra.mxu0 %v511_v10  ;;  %v589_v30 = vsel %vm556_vm0, %v569_v27, 0.0  ;;  %v592_v31 = vsel %vm556_vm0, %v570_v28, 0.0  ;;  %822 = vmatpush.bf16.msra.mxu2 %v2485_v21 }
  0x20   : > { %2304 = vmatpush.xpose.msk.msra.mxu1 %vm556_vm0, %v552_v22  ;;  %v2484_v22 = vld [vmem:[%s3349_s4 + $0x30] sm:$0xff] }
  0x21   : > { %537 = vmatpush.msra.mxu0 %v510_v17 }
  0x23   : > { %538 = vmatpush.msra.mxu0 %v509_v20  ;;  %v2722_v20 = vmov 0   ;;  %823 = vmatpush.bf16.msra.mxu2 %v2484_v22 }
  0x24   : > { %2301 = vmatmul.msk.f32.vlgmr.msra.gmra.mxu0 %vm516_vm1, %v507_v24  ;;  %2305 = vmatpush.xpose.msk.msra.mxu1 %vm556_vm0, %v551_v16 }
  0x25   : > { %575 = vadd.xlane.f32.xlu0 %v574_v23  ;;  %2561 = vset.pattern.permute.xlu2 %v2722_v20 }
  0x26   : > { %581 = vadd.xlane.f32.xlu1 %v580_v25  ;;  %587 = vadd.xlane.f32.xlu2 %v586_v26 }
  0x27   : > { %2562 = vset.pattern.permute.xlu0 %v2722_v20 }
  0x28   : > { %2306 = vmatpush.xpose.msk.msra.mxu1 %vm556_vm0, %v550_v9 }
  0x2c   : > { %2302 = vmatmul.msk.f32.gmra.mxu0 %vm516_vm1, %v508_v29  ;;  %2307 = vmatpush.xpose.msk.msra.mxu1 %vm556_vm0, %v549_v11 }
  0x2d   : > { %590 = vadd.xlane.f32.xlu0 %v589_v30 }
  0x2e   : > { %593 = vadd.xlane.f32.xlu1 %v592_v31  ;;  %v738_v31 = vld [vmem:[%s496_s18 + $0x8] sm:$0xff] }
  0x2f   : > { %vm740_vm7 = vcmp.gt.s32.totalorder %v738_v31, 0 }
  0x30   : > { %2308 = vmatpush.xpose.msk.msra.mxu1 %vm556_vm0, %v548_v6 }
  0x34   : > { %2309 = vmatpush.xpose.msk.msra.mxu1 %vm556_vm0, %v547_v5 }
  0x38   : > { %2310 = vmatpush.xpose.msk.msra.mxu1 %vm556_vm0, %v546_v2 }
  0x90   : > { %v573_v32 = vpop.xlane.xlu0 %572 }
  0x91   : > { %595 = vxpose.xlu1.b32.start [1/8] (short) (narrow) %v573_v32, 8  ;;  %v579_v34 = vpop.xlane.xlu1 %578  ;;  %v585_v44 = vpop.xlane.xlu2 %584  ;;  %v737_v32 = vld [vmem:[%s496_s18] sm:$0xff]  ;;  %s3364_s18 = smov 120  }
  0x92   : > { %vm739_vm9 = vcmp.gt.s32.totalorder %v737_v32, 0 }
  0x98   : > { %v576_v33 = vpop.xlane.xlu0 %575 }
  0x99   : > { %596 = vxpose.xlu1.b32.cont [2/8] (short) (narrow) %v576_v33, 8  ;;  %v582_v40 = vpop.xlane.xlu1 %581  ;;  %v588_v47 = vpop.xlane.xlu2 %587 }
  0xa0   : > { %v591_v48 = vpop.xlane.xlu0 %590 }
  0xa1   : > { %597 = vxpose.xlu1.b32.cont [3/8] (short) (narrow) %v579_v34, 8  ;;  %v540_v37 = vpop.f32.mrf.mxu0  ;;  %v594_v49 = vpop.xlane.xlu1 %593 }
  0xa2   : > { %v541_v38 = vadd.f32 %v540_v37, %v515_v36 }
  0xa4   : > { %2311 = vmatmul.msk.f32.vlgmr.msra.gmra.mxu1 %vm556_vm0, %v541_v38  ;;  %v554_v39 = vmul.f32 %v541_v38, %v541_v38 }
  0xa6   : > { %v557_v41 = vsel %vm556_vm0, %v554_v39, 0.0  ;;  %v2483_v39 = vld [vmem:[%s3349_s4 + $0x28] sm:$0xff] }
  0xa7   : > { %558 = vadd.xlane.f32.xlu2 %v557_v41  ;;  %824 = vmatpush.bf16.msra.mxu2 %v2483_v39  ;;  %v2481_v41 = vld [vmem:[%s3349_s4 + $0x18] sm:$0xff] }
  0xa9   : > { %598 = vxpose.xlu1.b32.cont [4/8] (short) (narrow) %v582_v40, 8  ;;  %v543_v42 = vpop.f32.mrf.mxu0  ;;  %v2482_v40 = vld [vmem:[%s3349_s4 + $0x20] sm:$0xff] }
  0xaa   : > { %v544_v43 = vadd.f32 %v543_v42, %v515_v36  ;;  %v2480_v42 = vld [vmem:[%s3349_s4 + $0x10] sm:$0xff] }
  0xab   : > { %825 = vmatpush.bf16.msra.mxu2 %v2482_v40 }
  0xac   : > { %2312 = vmatmul.msk.f32.gmra.mxu1 %vm556_vm0, %v544_v43  ;;  %v555_v45 = vmul.f32 %v544_v43, %v544_v43  ;;  %v2479_v43 = vld [vmem:[%s3349_s4 + $0x8] sm:$0xff] }
  0xae   : > { %v560_v46 = vsel %vm556_vm0, %v555_v45, 0.0 }
  0xaf   : > { %561 = vadd.xlane.f32.xlu0 %v560_v46  ;;  %826 = vmatpush.bf16.msra.mxu2 %v2481_v41 }
  0xb1   : > { %599 = vxpose.xlu1.b32.cont [5/8] (short) (narrow) %v585_v44, 8  ;;  %v2478_v44 = vld [vmem:[%s3349_s4] sm:$0xff] }
  0xb3   : > { %827 = vmatpush.bf16.msra.mxu2 %v2480_v42 }
  0xb7   : > { %828 = vmatpush.bf16.msra.mxu2 %v2479_v43 }
  0xb9   : > { %600 = vxpose.xlu1.b32.cont [6/8] (short) (narrow) %v588_v47, 8  ;;  %v2723_v47 = vmov 1.0|1.0  }
  0xbb   : > { %829 = vmatpush.bf16.msra.mxu2 %v2478_v44 }
  0xc1   : > { %601 = vxpose.xlu1.b32.cont [7/8] (short) (narrow) %v591_v48, 8  ;;  %v772_v48 = vld [vmem:[%s3350_s5] sm:$0xff] }
  0xc9   : > { %602 = vxpose.xlu1.b32.end [8/8] (short) (narrow) %v594_v49, 8 }
 0x11a   : > { %v559_v54 = vpop.xlane.xlu2 %558 }
 0x121   : > { %v674_v50 = vpop.f32.mrf.mxu1 }
 0x122   : > { %v680_v52 = vmul.f32 2.0, %v674_v50  ;;  %v562_v55 = vpop.xlane.xlu0 %561 }
 0x124   : > { %v682_v57 = vsub.f32 %v559_v54, %v680_v52  ;;  %v773_v52 = vld [vmem:[%s3350_s5 + $0x8] sm:$0xff] }
 0x129   : > { %v677_v51 = vpop.f32.mrf.mxu1 }
 0x12a   : > { %v681_v53 = vmul.f32 2.0, %v677_v51 }
 0x12c   : > { %v683_v58 = vsub.f32 %v562_v55, %v681_v53 }
 0x135   : > { %v611_v56 = vpop.trf.xlu1 }
 0x136   : > { %v684_v59 = vperm.slane %v611_v56, 0  ;;  %v2724_v56 = vmov 32.0  }
 0x137   : > { %2563 = vrcp.f32 %v2724_v56 }
 0x138   : > { %v686_v60 = vadd.f32 %v684_v59, %v683_v58  ;;  %v685_v61 = vadd.f32 %v684_v59, %v682_v57 }
 0x13a   : > { %v691_v62 = vsel %vm687_vm2, %v686_v60, inf  ;;  %v688_v63 = vsel %vm687_vm2, %v685_v61, inf }
 0x13b   : > { %692 = vmin.xlane.f32.xlu0 %v691_v62  ;;  %689 = vmin.xlane.f32.xlu2 %v688_v63 }
 0x13d   : > { %v2564_v57 = vpop.eup %2563 }
 0x13e   : > { %v844_v58 = vmul.f32 32.0, %v2564_v57  ;;  %vm848_vm15 = vweird.f32 %v2564_v57 }
 0x140   : > { %v845_v59 = vsub.f32 1.0, %v844_v58 }
 0x1ae   : > { %v693_v2 = vpop.xlane.xlu0 %692  ;;  %v690_v3 = vpop.xlane.xlu2 %689 }
 0x1af   : > { %vm697_vm3 = vcmp.le.f32.partialorder %v686_v60, %v693_v2  ;;  %vm696_vm4 = vcmp.le.f32.partialorder %v685_v61, %v690_v3  ;;  %v846_v60 = vmul.f32 %v2564_v57, %v845_v59 }
 0x1b0   : > { %v699_v4 = vsel %vm697_vm3, %v2937_v1, 64  ;;  %v698_v5 = vsel %vm696_vm4, %v2937_v1, 64 }
 0x1b1   : > { %v715_v6 = vsel %vm687_vm2, %v699_v4, 2147483647  ;;  %v700_v7 = vsel %vm687_vm2, %v698_v5, 2147483647  ;;  %v847_v61 = vadd.f32 %v2564_v57, %v846_v60 }
 0x1b2   : > { %v717_v8 = vshra.s32 %v715_v6, 16  ;;  %v702_v9 = vshra.s32 %v700_v7, 16  ;;  %v716_v12 = vand.u32 65535, %v715_v6  ;;  %v701_v13 = vand.u32 65535, %v700_v7 }
 0x1b3   : > { %v2991_v62 = vsel %vm848_vm15, %v2564_v57, %v847_v61 }
 0x1b4   : > { %v719_v10 = vcvt.s32.f32 %v717_v8  ;;  %v704_v11 = vcvt.s32.f32 %v702_v9  ;;  %v718_v16 = vcvt.s32.f32 %v716_v12  ;;  %v703_v17 = vcvt.s32.f32 %v701_v13  ;;  %v2487_v9 = vld [vmem:[%s3351_s6 + $0x8] sm:$0xff] }
 0x1b5   : > { %921 = vmatpush.bf16.msra.mxu3 %v2487_v9 }
 0x1b6   : > { %720 = vmin.xlane.f32.xlu0 %v719_v10  ;;  %705 = vmin.xlane.f32.xlu2 %v704_v11 }
 0x229   : > { %v721_v14 = vpop.xlane.xlu0 %720  ;;  %v706_v15 = vpop.xlane.xlu2 %705 }
 0x22a   : > { %vm722_vm5 = vcmp.eq.f32.partialorder %v719_v10, %v721_v14  ;;  %vm707_vm6 = vcmp.eq.f32.partialorder %v704_v11, %v706_v15  ;;  %v727_v23 = vcvt.f32.s32 %v721_v14  ;;  %v712_v24 = vcvt.f32.s32 %v706_v15  ;;  %v2486_v11 = vld [vmem:[%s3351_s6] sm:$0xff] }
 0x22b   : > { %v723_v18 = vsel %vm722_vm5, %v718_v16, inf  ;;  %v708_v19 = vsel %vm707_vm6, %v703_v17, inf  ;;  %922 = vmatpush.bf16.msra.mxu3 %v2486_v11 }
 0x22c   : > { %724 = vmin.xlane.f32.xlu0 %v723_v18  ;;  %709 = vmin.xlane.f32.xlu2 %v708_v19  ;;  %v728_v27 = vshll.u32 %v727_v23, 16  ;;  %v713_v28 = vshll.u32 %v712_v24, 16 }
 0x29f   : > { %v725_v25 = vpop.xlane.xlu0 %724  ;;  %v710_v26 = vpop.xlane.xlu2 %709 }
 0x2a0   : > { %v726_v29 = vcvt.f32.s32 %v725_v25  ;;  %v711_v30 = vcvt.f32.s32 %v710_v26 }
 0x2a2   : > { %v729_v33 = vadd.s32 %v728_v27, %v726_v29  ;;  %v714_v34 = vadd.s32 %v713_v28, %v711_v30  ;;  %v3010_v28 = vld [vmem:[%s3356_s11] sm:$0xff] }
 0x2a3   : > { %v888_v31 = vperm.slane %v3010_v28, 0  ;;  %v899_v42 = vperm.slane %v3010_v28, 2 }
 0x2a4   : > { %vm732_vm10 = vcmp.lt.s32.totalorder %v729_v33, 63  ;;  %vm730_vm11 = vcmp.lt.s32.totalorder %v714_v34, 63 }
 0x2a5   : > { %v733_v35 = vsel %vm732_vm10, %v729_v33, 63  ;;  %v731_v36 = vsel %vm730_vm11, %v714_v34, 63  ;;  %vm1079_vm10 = vcmask 1043456  }
 0x2a6   : > { %v742_v37 = vsel %vm740_vm7, 64, %v733_v35  ;;  %v741_v38 = vsel %vm739_vm9, 64, %v731_v36  ;;  %735 = vst.msk [vmem:[%s503_s20] sm:$0xff] %vm734_vm8, %v731_v36  ;;  %v891_v36 = vperm.slane %v3010_v28, 1  ;;  %vm963_vm9 = vcmask 130048  }
 0x2a7   : > { %747 = vperm.xlu0 %2562, %v742_v37   ;;  %744 = vperm.xlu2 %2561, %v741_v38   ;;  %736 = vst.msk [vmem:[%s503_s20 + $0x8] sm:$0xff] %vm734_vm8, %v733_v35  ;;  %vm942_vm8 = vcmask 64512   ;;  %s3369_s20 = smov 112  }
 0x301   : > { %v745_v45 = vpop.permute.xlu2 %744 }
 0x302   : > { %vm749_vm12 = vcmp.eq.s32.totalorder %v2937_v1, %v745_v45 }
 0x319   : > { %v748_v46 = vpop.permute.xlu0 %747 }
 0x31a   : > { %vm750_vm13 = vcmp.eq.s32.totalorder %v2937_v1, %v748_v46 }
 0x31b   : > { %vm2347_vm14 = vmpackc.low %vm750_vm13, %vm749_vm12 }
 0x31c   : > { %2348 = vmatmul.msk.bf16.vlgmr.msra.gmra.mxu2 %vm2347_vm14, %v2723_v47 }
 0x39f   : > { %v831_v49 = vpop.f32.mrf.mxu2 }
 0x3a0   : > { %v2980_v50 = vadd.f32 %v831_v49, %v772_v48 }
 0x3a2   : > { %v837_v51 = vsel %vm556_vm0, %v2980_v50, 0.0 }
 0x3a3   : > { %838 = vadd.xlane.f32.xlu2 %v837_v51 }
 0x3a7   : > { %v833_v53 = vpop.f32.mrf.mxu2 }
 0x3a8   : > { %v2987_v54 = vadd.f32 %v833_v53, %v773_v52 }
 0x3aa   : > { %v840_v55 = vsel %vm556_vm0, %v2987_v54, 0.0 }
 0x3ab   : > { %841 = vadd.xlane.f32.xlu0 %v840_v55 }
 0x416   : > { %v839_v63 = vpop.xlane.xlu2 %838 }
 0x417   : > { %v850_v0 = vmul.f32 %v2991_v62, %v839_v63 }
 0x419   : > { %v852_v1 = vsub.f32 %v2980_v50, %v850_v0 }
 0x41b   : > { %v854_v2 = vmul.f32 %v852_v1, %v852_v1 }
 0x41d   : > { %v856_v3 = vsel %vm556_vm0, %v854_v2, 0.0 }
 0x41e   : > { %v842_v4 = vpop.xlane.xlu0 %841  ;;  %857 = vadd.xlane.f32.xlu2 %v856_v3 }
 0x41f   : > { %v851_v5 = vmul.f32 %v2991_v62, %v842_v4 }
 0x421   : > { %v853_v6 = vsub.f32 %v2987_v54, %v851_v5 }
 0x423   : > { %v855_v7 = vmul.f32 %v853_v6, %v853_v6 }
 0x425   : > { %v859_v8 = vsel %vm556_vm0, %v855_v7, 0.0 }
 0x426   : > { %860 = vadd.xlane.f32.xlu2 %v859_v8  ;;  %v931_v8 = vld [vmem:[%s3352_s7] sm:$0xf] }
 0x427   : > { %v1101_v9 = vsel %vm1079_vm10, %v931_v8, 0 }
 0x428   : > { %1110 = vmatpush.bf16.msrb.mxu2 %v1101_v9 }
 0x491   : > { %v858_v10 = vpop.xlane.xlu2 %857 }
 0x492   : > { %v862_v12 = vmul.f32 %v858_v10, %v2991_v62 }
 0x494   : > { %v864_v13 = vadd.f32 1e-05, %v862_v12 }
 0x496   : > { %2565 = vrsqrt.f32 %v864_v13  ;;  %vm872_vm3 = vweird.f32 %v864_v13 }
 0x499   : > { %v861_v14 = vpop.xlane.xlu2 %860 }
 0x49a   : > { %v863_v15 = vmul.f32 %v861_v14, %v2991_v62 }
 0x49c   : > { %v2566_v16 = vpop.eup %2565  ;;  %v865_v17 = vadd.f32 1e-05, %v863_v15 }
 0x49d   : > { %v867_v18 = vmul.f32 %v2566_v16, %v864_v13  ;;  %vm873_vm1 = vweird.f32 %v2566_v16 }
 0x49e   : > { %2567 = vrsqrt.f32 %v865_v17  ;;  %vm874_vm4 = vmor %vm872_vm3, %vm873_vm1  ;;  %vm882_vm6 = vweird.f32 %v865_v17 }
 0x49f   : > { %v868_v19 = vmul.f32 %v2566_v16, %v867_v18 }
 0x4a1   : > { %v869_v20 = vmul.f32 0.5, %v868_v19 }
 0x4a3   : > { %v870_v21 = vsub.f32 1.5, %v869_v20 }
 0x4a4   : > { %v2568_v22 = vpop.eup %2567 }
 0x4a5   : > { %v871_v23 = vmul.f32 %v2566_v16, %v870_v21  ;;  %v877_v24 = vmul.f32 %v2568_v22, %v865_v17  ;;  %vm883_vm5 = vweird.f32 %v2568_v22 }
 0x4a6   : > { %vm884_vm7 = vmor %vm882_vm6, %vm883_vm5 }
 0x4a7   : > { %v878_v25 = vmul.f32 %v2568_v22, %v877_v24  ;;  %v875_v26 = vsel %vm874_vm4, %v2566_v16, %v871_v23 }
 0x4a8   : > { %v886_v30 = vmul.f32 %v875_v26, %v852_v1 }
 0x4a9   : > { %v879_v27 = vmul.f32 0.5, %v878_v25 }
 0x4aa   : > { %v889_v35 = vmul.f32 %v888_v31, %v886_v30 }
 0x4ab   : > { %v880_v29 = vsub.f32 1.5, %v879_v27 }
 0x4ac   : > { %v892_v38 = vadd.f32 %v891_v36, %v889_v35 }
 0x4ad   : > { %v881_v32 = vmul.f32 %v2568_v22, %v880_v29 }
 0x4af   : > { %v885_v33 = vsel %vm884_vm7, %v2568_v22, %v881_v32 }
 0x4b0   : > { %v887_v34 = vmul.f32 %v885_v33, %v853_v6 }
 0x4b2   : > { %v890_v37 = vmul.f32 %v888_v31, %v887_v34 }
 0x4b4   : > { %v893_v39 = vadd.f32 %v891_v36, %v890_v37 }
 0x4b6   : > { %v898_v40 = vpack.c.bf16 %v893_v39, %v892_v38 }
 0x4b8   : > { %2357 = vmatmul.msk.bf16.vlgmr.msra.gmra.mxu3 %vm556_vm0, %v898_v40 }
 0x53b   : > { %v924_v41 = vpop.f32.mrf.mxu3 }
 0x53c   : > { %v925_v43 = vadd.f32 %v924_v41, %v899_v42 }
 0x53e   : > { %v929_v45 = vpack.c.bf16 %v925_v43, %v925_v43 }
 0x540   : > { %v937_v48 = vunpack.c.l.b16 %v929_v45 }
 0x543   : > { %v926_v44 = vpop.f32.mrf.mxu3 }
 0x544   : > { %v927_v46 = vadd.f32 %v926_v44, %v899_v42 }
 0x546   : > { %v930_v47 = vpack.c.bf16 %v927_v46, %v927_v46 }
 0x548   : > { %v938_v49 = vunpack.c.l.b16 %v930_v47 }
 0x54a   : > { %v3016_v51 = vpack.c.b16 %v938_v49, %v937_v48 }
 0x54c   : > { %940 = vrot.lane.b32.xlu2 %v3016_v51, %s2725_s21 }
 0x5a6   : > { %v941_v52 = vpop.permute.xlu2 %940 }
 0x5a7   : > { %v947_v53 = vsel %vm942_vm8, %v941_v52, 0 }
 0x5a8   : > { %956 = vmatpush.bf16.xpose.msrb.mxu3 %v947_v53 }
 0x5af   : > { %2358 = vmatmul.msk.bf16.vlgmr.msrb.gmra.mxu3 %vm942_vm8, %v3016_v51 }
 0x632   : > { %v958_v55 = vpop.f32.mrf.mxu3 }
 0x633   : > { %v964_v56 = vsel %vm963_vm9, %v958_v55, -inf }
 0x634   : > { %965 = vmax.xlane.f32.xlu0 %v964_v56 }
 0x63a   : > { %v960_v57 = vpop.f32.mrf.mxu3 }
 0x63b   : > { %v967_v58 = vsel %vm963_vm9, %v960_v57, -inf }
 0x63c   : > { %968 = vmax.xlane.f32.xlu1 %v967_v58 }
 0x6a7   : > { %v966_v59 = vpop.xlane.xlu0 %965 }
 0x6a8   : > { %v970_v60 = vsub.f32 %v958_v55, %v966_v59 }
 0x6aa   : > { %v972_v61 = vmul.f32 1.442695, %v970_v60 }
 0x6ac   : > { %2569 = vpow2.f32 %v972_v61 }
 0x6af   : > { %v969_v63 = vpop.xlane.xlu1 %968 }
 0x6b0   : > { %v971_v0 = vsub.f32 %v960_v57, %v969_v63 }
 0x6b2   : > { %v2570_v1 = vpop.eup %2569  ;;  %v974_v2 = vmul.f32 1.442695, %v971_v0 }
 0x6b3   : > { %v976_v3 = vsel %vm963_vm9, %v2570_v1, 0.0 }
 0x6b4   : > { %2571 = vpow2.f32 %v974_v2  ;;  %977 = vadd.xlane.f32.xlu0 %v976_v3 }
 0x6ba   : > { %v2572_v4 = vpop.eup %2571 }
 0x6bb   : > { %v979_v5 = vsel %vm963_vm9, %v2572_v4, 0.0 }
 0x6bc   : > { %980 = vadd.xlane.f32.xlu2 %v979_v5 }
 0x6c8   : > { %987 = vrot.lane.b32.xlu0 %v3016_v51, %s2726_s26 }
 0x6d0   : > { %1010 = vrot.lane.b32.xlu0 %v3016_v51, %s3368_s27  ;;  %s3383_s27 = smov 112  }
 0x6d4   : > { %1119 = vrot.lane.b32.xlu2 %v3016_v51, %s3371_s28  ;;  %s3386_s28 = smov 120  }
 0x6d8   : > { %1008 = vrot.lane.b32.xlu0 %v3016_v51, %s3364_s18  ;;  %s3381_s18 = smov 80  }
 0x6e0   : > { %1209 = vrot.lane.b32.xlu0 %v3016_v51, %s3370_s15 }
 0x6e8   : > { %1207 = vrot.lane.b32.xlu0 %v3016_v51, %s3365_s22  ;;  %s3382_s22 = smov 72  }
 0x6f0   : > { %1117 = vrot.lane.b32.xlu0 %v3016_v51, %s3369_s20  ;;  %s2504_s20 = sshll.u32 %s2834_s17, 4 }
 0x727   : > { %v978_v6 = vpop.xlane.xlu0 %977 }
 0x72f   : > { %v981_v7 = vpop.xlane.xlu2 %980 }
 0x730   : > { %2573 = vrcp.f32 %v981_v7 }
 0x731   : > { %2575 = vrcp.f32 %v978_v6 }
 0x736   : > { %v2574_v10 = vpop.eup %2573 }
 0x737   : > { %v2576_v11 = vpop.eup %2575  ;;  %v985_v12 = vmul.f32 %v2574_v10, %v2572_v4  ;;  %v1120_v16 = vpop.permute.xlu2 %1119 }
 0x738   : > { %v984_v13 = vmul.f32 %v2576_v11, %v2570_v1  ;;  %v1125_v19 = vsel %vm942_vm8, %v1120_v16, 0 }
 0x73a   : > { %v988_v14 = vpop.permute.xlu0 %987  ;;  %v986_v15 = vpack.c.bf16 %v985_v12, %v984_v13 }
 0x73b   : > { %1000 = vmatpush.bf16.msrb.mxu0 %v988_v14 }
 0x73e   : > { %2359 = vmatmul.msk.bf16.vlgmr.msrb.gmra.mxu0 %vm963_vm9, %v986_v15 }
 0x742   : > { %v1011_v17 = vpop.permute.xlu0 %1010 }
 0x743   : > { %v1016_v18 = vsel %vm942_vm8, %v1011_v17, 0 }
 0x744   : > { %1025 = vmatpush.bf16.xpose.msra.mxu3 %v1016_v18 }
 0x74a   : > { %v1009_v20 = vpop.permute.xlu0 %1008 }
 0x74b   : > { %2360 = vmatmul.msk.bf16.vlgmr.msra.gmra.mxu3 %vm942_vm8, %v1009_v20 }
 0x74c   : > { %1134 = vmatpush.bf16.xpose.msrb.mxu3 %v1125_v19 }
 0x752   : > { %v1210_v21 = vpop.permute.xlu0 %1209 }
 0x753   : > { %v1215_v22 = vsel %vm942_vm8, %v1210_v21, 0  ;;  %v932_v21 = vld [vmem:[%s3352_s7 + $0x4] sm:$0xf] }
 0x754   : > { %1224 = vmatpush.bf16.xpose.msra.mxu2 %v1215_v22 }
 0x75a   : > { %v1208_v23 = vpop.permute.xlu0 %1207 }
 0x762   : > { %v1118_v24 = vpop.permute.xlu0 %1117 }
 0x763   : > { %2364 = vmatmul.msk.bf16.vlgmr.msrb.gmra.mxu3 %vm942_vm8, %v1118_v24 }
 0x7bb   : > { %v1002_v25 = vpop.f32.mrf.mxu0 }
 0x7c3   : > { %v1004_v26 = vpop.f32.mrf.mxu0 }
 0x7c4   : > { %v1007_v27 = vpack.c.bf16 %v1004_v26, %v1002_v25 }
 0x7c6   : > { %2363 = vmatmul.msk.bf16.vlgmr.msrb.gmra.mxu2 %vm942_vm8, %v1007_v27 }
 0x7ce   : > { %v1027_v29 = vpop.f32.mrf.mxu3 }
 0x7cf   : > { %v1032_v30 = vsel %vm963_vm9, %v1027_v29, -inf }
 0x7d0   : > { %1033 = vmax.xlane.f32.xlu0 %v1032_v30 }
 0x7d6   : > { %v1029_v31 = vpop.f32.mrf.mxu3  ;;  %2367 = vmatmul.msk.bf16.vlgmr.msra.gmra.mxu2 %vm942_vm8, %v1208_v23  ;;  %v1081_v23 = vsel %vm1079_vm10, %v932_v21, 0 }
 0x7d7   : > { %v1035_v32 = vsel %vm963_vm9, %v1029_v31, -inf  ;;  %1090 = vmatpush.bf16.msrb.mxu1 %v1081_v23 }
 0x7d8   : > { %1036 = vmax.xlane.f32.xlu2 %v1035_v32 }
 0x7e6   : > { %v1136_v33 = vpop.f32.mrf.mxu3 }
 0x7e7   : > { %v1141_v34 = vsel %vm963_vm9, %v1136_v33, -inf }
 0x7e8   : > { %1142 = vmax.xlane.f32.xlu1 %v1141_v34 }
 0x7ee   : > { %v1138_v35 = vpop.f32.mrf.mxu3 }
 0x7ef   : > { %v1144_v36 = vsel %vm963_vm9, %v1138_v35, -inf }
 0x7f0   : > { %1145 = vmax.xlane.f32.xlu0 %v1144_v36 }
 0x804   : > { %1055 = vrot.lane.b32.xlu0 %v3016_v51, %s3363_s25  ;;  %s3366_s25 = smov 48  }
 0x843   : > { %v1034_v43 = vpop.xlane.xlu0 %1033 }
 0x844   : > { %v1038_v45 = vsub.f32 %v1027_v29, %v1034_v43 }
 0x846   : > { %v1040_v48 = vmul.f32 1.442695, %v1038_v45 }
 0x849   : > { %v3059_v37 = vpop.f32.mrf.mxu2 }
 0x84b   : > { %v1037_v38 = vpop.xlane.xlu2 %1036 }
 0x84c   : > { %v1039_v39 = vsub.f32 %v1029_v31, %v1037_v38 }
 0x84e   : > { %v1042_v40 = vmul.f32 1.442695, %v1039_v39 }
 0x850   : > { %2577 = vpow2.f32 %v1042_v40 }
 0x851   : > { %v3061_v41 = vpop.f32.mrf.mxu2  ;;  %2579 = vpow2.f32 %v1040_v48 }
 0x856   : > { %v2578_v42 = vpop.eup %2577 }
 0x857   : > { %v1047_v44 = vsel %vm963_vm9, %v2578_v42, 0.0  ;;  %v2580_v60 = vpop.eup %2579 }
 0x858   : > { %1048 = vadd.xlane.f32.xlu2 %v1047_v44  ;;  %v1044_v61 = vsel %vm963_vm9, %v2580_v60, 0.0  ;;  %v933_v44 = vld [vmem:[%s3352_s7 + $0x8] sm:$0xf] }
 0x859   : > { %v1226_v46 = vpop.f32.mrf.mxu2  ;;  %v1189_v45 = vsel %vm1079_vm10, %v933_v44, 0 }
 0x85a   : > { %v1231_v47 = vsel %vm963_vm9, %v1226_v46, -inf  ;;  %1198 = vmatpush.bf16.msra.mxu1 %v1189_v45  ;;  %v1349_v45 = vperm.slane %v3010_v28, 5 }
 0x85b   : > { %1232 = vmax.xlane.f32.xlu1 %v1231_v47  ;;  %v1143_v49 = vpop.xlane.xlu1 %1142 }
 0x85c   : > { %v1147_v52 = vsub.f32 %v1136_v33, %v1143_v49 }
 0x85e   : > { %v1149_v58 = vmul.f32 1.442695, %v1147_v52 }
 0x861   : > { %v1228_v53 = vpop.f32.mrf.mxu2 }
 0x862   : > { %v1234_v55 = vsel %vm963_vm9, %v1228_v53, -inf }
 0x863   : > { %1235 = vmax.xlane.f32.xlu1 %v1234_v55  ;;  %v1146_v56 = vpop.xlane.xlu0 %1145 }
 0x864   : > { %v1148_v57 = vsub.f32 %v1138_v35, %v1146_v56 }
 0x866   : > { %v1151_v59 = vmul.f32 1.442695, %v1148_v57 }
 0x868   : > { %2581 = vpow2.f32 %v1151_v59 }
 0x869   : > { %2583 = vpow2.f32 %v1149_v58 }
 0x86b   : > { %1045 = vadd.xlane.f32.xlu1 %v1044_v61 }
 0x86e   : > { %v2582_v63 = vpop.eup %2581 }
 0x86f   : > { %v2584_v0 = vpop.eup %2583  ;;  %v1156_v1 = vsel %vm963_vm9, %v2582_v63, 0.0 }
 0x870   : > { %1157 = vadd.xlane.f32.xlu2 %v1156_v1  ;;  %v1153_v2 = vsel %vm963_vm9, %v2584_v0, 0.0  ;;  %v1299_v1 = vperm.slane %v3010_v28, 3 }
 0x873   : > { %1154 = vadd.xlane.f32.xlu1 %v1153_v2 }
 0x876   : > { %v1056_v3 = vpop.permute.xlu0 %1055 }
 0x877   : > { %1068 = vmatpush.bf16.msra.mxu0 %v1056_v3 }
 0x8cb   : > { %v1049_v11 = vpop.xlane.xlu2 %1048 }
 0x8ce   : > { %v1233_v4 = vpop.xlane.xlu1 %1232 }
 0x8cf   : > { %v1237_v5 = vsub.f32 %v1226_v46, %v1233_v4  ;;  %v934_v46 = vld [vmem:[%s3352_s7 + $0xc] sm:$0xf] }
 0x8d0   : > { %v1279_v47 = vsel %vm1079_vm10, %v934_v46, 0 }
 0x8d1   : > { %v1239_v6 = vmul.f32 1.442695, %v1237_v5 }
 0x8d3   : > { %2585 = vpow2.f32 %v1239_v6 }
 0x8d6   : > { %v1236_v7 = vpop.xlane.xlu1 %1235 }
 0x8d7   : > { %v1238_v8 = vsub.f32 %v1228_v53, %v1236_v7 }
 0x8d9   : > { %v2586_v9 = vpop.eup %2585  ;;  %v1241_v10 = vmul.f32 1.442695, %v1238_v8 }
 0x8da   : > { %v1243_v12 = vsel %vm963_vm9, %v2586_v9, 0.0 }
 0x8db   : > { %2587 = vpow2.f32 %v1241_v10  ;;  %1244 = vadd.xlane.f32.xlu1 %v1243_v12 }
 0x8dc   : > { %2589 = vrcp.f32 %v1049_v11 }
 0x8de   : > { %v1046_v13 = vpop.xlane.xlu1 %1045 }
 0x8df   : > { %2591 = vrcp.f32 %v1046_v13 }
 0x8e1   : > { %v2588_v14 = vpop.eup %2587 }
 0x8e2   : > { %v1246_v15 = vsel %vm963_vm9, %v2588_v14, 0.0  ;;  %v2590_v16 = vpop.eup %2589 }
 0x8e3   : > { %1247 = vadd.xlane.f32.xlu2 %v1246_v15  ;;  %v1053_v18 = vmul.f32 %v2590_v16, %v2578_v42  ;;  %v1158_v22 = vpop.xlane.xlu2 %1157 }
 0x8e5   : > { %v2592_v17 = vpop.eup %2591 }
 0x8e6   : > { %v1052_v19 = vmul.f32 %v2592_v17, %v2580_v60  ;;  %v1155_v24 = vpop.xlane.xlu1 %1154 }
 0x8e7   : > { %2593 = vrcp.f32 %v1155_v24 }
 0x8e8   : > { %v1054_v20 = vpack.c.bf16 %v1053_v18, %v1052_v19  ;;  %2595 = vrcp.f32 %v1158_v22  ;;  %v2489_v19 = vld [vmem:[%s3353_s8 + $0x8] sm:$0xff]  ;;  %v2488_v22 = vld [vmem:[%s3353_s8] sm:$0xff] }
 0x8ea   : > { %2361 = vmatmul.msk.bf16.vlgmr.msra.gmra.mxu0 %vm963_vm9, %v1054_v20 }
 0x8ed   : > { %v2594_v26 = vpop.eup %2593 }
 0x8ee   : > { %v2596_v29 = vpop.eup %2595  ;;  %v1161_v30 = vmul.f32 %v2594_v26, %v2584_v0 }
 0x8ef   : > { %v1162_v31 = vmul.f32 %v2596_v29, %v2582_v63 }
 0x8f1   : > { %v1163_v32 = vpack.c.bf16 %v1162_v31, %v1161_v30 }
 0x8f4   : > { %1254 = vrot.lane.b32.xlu1 %v3016_v51, %s3367_s19  ;;  %s3388_s19 = smov 40  }
 0x8fb   : > { %1164 = vrot.lane.b32.xlu2 %v3016_v51, %s3366_s25  ;;  %s3387_s25 = smov 56  }
 0x94e   : > { %v1245_v27 = vpop.xlane.xlu1 %1244 }
 0x956   : > { %v1248_v25 = vpop.xlane.xlu2 %1247 }
 0x957   : > { %2597 = vrcp.f32 %v1248_v25 }
 0x958   : > { %2599 = vrcp.f32 %v1245_v27 }
 0x95d   : > { %v2598_v33 = vpop.eup %2597 }
 0x95e   : > { %v1165_v51 = vpop.permute.xlu2 %1164  ;;  %v2600_v34 = vpop.eup %2599  ;;  %v1252_v35 = vmul.f32 %v2598_v33, %v2588_v14 }
 0x95f   : > { %1177 = vmatpush.bf16.msrb.mxu0 %v1165_v51  ;;  %v1251_v36 = vmul.f32 %v2600_v34, %v2586_v9 }
 0x961   : > { %v1253_v40 = vpack.c.bf16 %v1252_v35, %v1251_v36 }
 0x962   : > { %2365 = vmatmul.msk.bf16.vlgmr.msrb.gmra.mxu0 %vm963_vm9, %v1163_v32 }
 0x963   : > { %1288 = vmatpush.bf16.msra.mxu0 %v1279_v47 }
 0x966   : > { %v1255_v38 = vpop.permute.xlu1 %1254 }
 0x967   : > { %v1070_v39 = vpop.f32.mrf.mxu0  ;;  %1267 = vmatpush.bf16.msra.mxu3 %v1255_v38 }
 0x96a   : > { %2368 = vmatmul.msk.bf16.vlgmr.msra.gmra.mxu3 %vm963_vm9, %v1253_v40  ;;  %v1346_v40 = vperm.slane %v3010_v28, 4 }
 0x96f   : > { %v1072_v42 = vpop.f32.mrf.mxu0 }
 0x970   : > { %v1075_v43 = vpack.c.bf16 %v1072_v42, %v1070_v39 }
 0x972   : > { %2362 = vmatmul.msk.bf16.vlgmr.msrb.gmra.mxu1 %vm942_vm8, %v1075_v43 }
 0x973   : > { %1379 = vmatpush.bf16.msrb.mxu1 %v2489_v19 }
 0x977   : > { %1380 = vmatpush.bf16.msrb.mxu1 %v2488_v22 }
 0x9df   : > { %v1179_v48 = vpop.f32.mrf.mxu0 }
 0x9e7   : > { %v1181_v49 = vpop.f32.mrf.mxu0 }
 0x9e8   : > { %v1184_v52 = vpack.c.bf16 %v1181_v49, %v1179_v48 }
 0x9ea   : > { %2366 = vmatmul.msk.bf16.vlgmr.msra.gmra.mxu1 %vm942_vm8, %v1184_v52 }
 0x9ed   : > { %v1269_v53 = vpop.f32.mrf.mxu3 }
 0x9ef   : > { %v1092_v57 = vpop.f32.mrf.mxu1 }
 0x9f0   : > { %v1113_v60 = vadd.f32 %v3059_v37, %v1092_v57  ;;  %v2491_v57 = vld [vmem:[%s3354_s9 + $0x8] sm:$0xff] }
 0x9f5   : > { %v1271_v55 = vpop.f32.mrf.mxu3 }
 0x9f6   : > { %v1274_v56 = vpack.c.bf16 %v1271_v55, %v1269_v53  ;;  %v2493_v55 = vld [vmem:[%s3354_s9 + $0x18] sm:$0xff] }
 0x9f7   : > { %v1094_v58 = vpop.f32.mrf.mxu1  ;;  %1445 = vmatpush.bf16.msrb.mxu2 %v2493_v55 }
 0x9f8   : > { %2369 = vmatmul.msk.bf16.vlgmr.msra.gmra.mxu0 %vm942_vm8, %v1274_v56  ;;  %v1115_v4 = vadd.f32 %v3061_v41, %v1094_v58  ;;  %v2492_v56 = vld [vmem:[%s3354_s9 + $0x10] sm:$0xff]  ;;  %v2490_v58 = vld [vmem:[%s3354_s9] sm:$0xff] }
 0x9fb   : > { %1446 = vmatpush.bf16.msrb.mxu2 %v2492_v56  ;;  %v3165_v56 = vld [vmem:[%s3356_s11 + $0x8] sm:$0xff] }
 0x9ff   : > { %1447 = vmatpush.bf16.msrb.mxu2 %v2491_v57 }
 0xa03   : > { %1448 = vmatpush.bf16.msrb.mxu2 %v2490_v58 }
 0xa67   : > { %v1200_v59 = vpop.f32.mrf.mxu1 }
 0xa68   : > { %v1205_v61 = vadd.f32 %v1200_v59, %v1113_v60  ;;  %v1357_v59 = vperm.slane %v3010_v28, 6 }
 0xa6f   : > { %v1202_v3 = vpop.f32.mrf.mxu1 }
 0xa70   : > { %v1206_v6 = vadd.f32 %v1202_v3, %v1115_v4 }
 0xa75   : > { %v1290_v63 = vpop.f32.mrf.mxu0 }
 0xa76   : > { %v1295_v0 = vadd.f32 %v1290_v63, %v1205_v61 }
 0xa78   : > { %v1297_v2 = vadd.f32 %v1295_v0, %v2980_v50 }
 0xa7a   : > { %v3097_v5 = vadd.f32 %v1299_v1, %v1297_v2 }
 0xa7c   : > { %v1302_v7 = vsel %vm556_vm0, %v3097_v5, 0.0 }
 0xa7d   : > { %v1292_v8 = vpop.f32.mrf.mxu0  ;;  %1303 = vadd.xlane.f32.xlu0 %v1302_v7 }
 0xa7e   : > { %v1296_v9 = vadd.f32 %v1292_v8, %v1206_v6 }
 0xa80   : > { %v1298_v37 = vadd.f32 %v1296_v9, %v2987_v54 }
 0xa82   : > { %v3102_v10 = vadd.f32 %v1299_v1, %v1298_v37 }
 0xa84   : > { %v1305_v11 = vsel %vm556_vm0, %v3102_v10, 0.0 }
 0xa85   : > { %1306 = vadd.xlane.f32.xlu1 %v1305_v11 }
 0xaf0   : > { %v1304_v50 = vpop.xlane.xlu0 %1303 }
 0xaf1   : > { %v1308_v41 = vmul.f32 %v1304_v50, %v2991_v62 }
 0xaf3   : > { %v1310_v12 = vsub.f32 %v3097_v5, %v1308_v41 }
 0xaf5   : > { %v1312_v13 = vmul.f32 %v1310_v12, %v1310_v12 }
 0xaf7   : > { %v1314_v14 = vsel %vm556_vm0, %v1312_v13, 0.0 }
 0xaf8   : > { %1315 = vadd.xlane.f32.xlu2 %v1314_v14  ;;  %v1307_v15 = vpop.xlane.xlu1 %1306 }
 0xaf9   : > { %v1309_v16 = vmul.f32 %v1307_v15, %v2991_v62 }
 0xafb   : > { %v1311_v54 = vsub.f32 %v3102_v10, %v1309_v16 }
 0xafd   : > { %v1313_v17 = vmul.f32 %v1311_v54, %v1311_v54 }
 0xaff   : > { %v1317_v18 = vsel %vm556_vm0, %v1313_v17, 0.0 }
 0xb00   : > { %1318 = vadd.xlane.f32.xlu0 %v1317_v18  ;;  %v1457_v18 = vperm.slane %v3010_v28, 7 }
 0xb6b   : > { %v1316_v20 = vpop.xlane.xlu2 %1315 }
 0xb6c   : > { %v1320_v21 = vmul.f32 %v1316_v20, %v2991_v62 }
 0xb6e   : > { %v1322_v23 = vadd.f32 1e-05, %v1320_v21 }
 0xb70   : > { %2601 = vrsqrt.f32 %v1322_v23  ;;  %vm1330_vm12 = vweird.f32 %v1322_v23 }
 0xb73   : > { %v1319_v24 = vpop.xlane.xlu0 %1318 }
 0xb74   : > { %v1321_v25 = vmul.f32 %v1319_v24, %v2991_v62 }
 0xb76   : > { %v2602_v26 = vpop.eup %2601  ;;  %v1323_v27 = vadd.f32 1e-05, %v1321_v25 }
 0xb77   : > { %v1325_v29 = vmul.f32 %v2602_v26, %v1322_v23  ;;  %vm1331_vm11 = vweird.f32 %v2602_v26 }
 0xb78   : > { %2603 = vrsqrt.f32 %v1323_v27  ;;  %vm1332_vm13 = vmor %vm1330_vm12, %vm1331_vm11  ;;  %vm1340_vm15 = vweird.f32 %v1323_v27 }
 0xb79   : > { %v1326_v30 = vmul.f32 %v2602_v26, %v1325_v29 }
 0xb7b   : > { %v1327_v31 = vmul.f32 0.5, %v1326_v30 }
 0xb7d   : > { %v1328_v51 = vsub.f32 1.5, %v1327_v31 }
 0xb7e   : > { %v2604_v32 = vpop.eup %2603 }
 0xb7f   : > { %v1329_v33 = vmul.f32 %v2602_v26, %v1328_v51  ;;  %v1335_v34 = vmul.f32 %v2604_v32, %v1323_v27  ;;  %vm1341_vm14 = vweird.f32 %v2604_v32 }
 0xb80   : > { %vm1342_vm1 = vmor %vm1340_vm15, %vm1341_vm14 }
 0xb81   : > { %v1336_v35 = vmul.f32 %v2604_v32, %v1335_v34  ;;  %v1333_v36 = vsel %vm1332_vm13, %v2602_v26, %v1329_v33  ;;  %v2495_v34 = vld [vmem:[%s3351_s6 + $0x18] sm:$0xff] }
 0xb82   : > { %v1344_v42 = vmul.f32 %v1333_v36, %v1310_v12  ;;  %1540 = vmatpush.bf16.msrb.mxu3 %v2495_v34 }
 0xb83   : > { %v1337_v38 = vmul.f32 0.5, %v1336_v35 }
 0xb84   : > { %v1347_v46 = vmul.f32 %v1346_v40, %v1344_v42 }
 0xb85   : > { %v1338_v39 = vsub.f32 1.5, %v1337_v38  ;;  %v2494_v38 = vld [vmem:[%s3351_s6 + $0x10] sm:$0xff] }
 0xb86   : > { %v1350_v49 = vadd.f32 %v1349_v45, %v1347_v46  ;;  %1541 = vmatpush.bf16.msrb.mxu3 %v2494_v38 }
 0xb87   : > { %v1339_v43 = vmul.f32 %v2604_v32, %v1338_v39 }
 0xb89   : > { %v1343_v44 = vsel %vm1342_vm1, %v2604_v32, %v1339_v43 }
 0xb8a   : > { %v1345_v47 = vmul.f32 %v1343_v44, %v1311_v54 }
 0xb8c   : > { %v1348_v48 = vmul.f32 %v1346_v40, %v1345_v47 }
 0xb8e   : > { %v1351_v52 = vadd.f32 %v1349_v45, %v1348_v48 }
 0xb90   : > { %v1356_v53 = vpack.c.bf16 %v1351_v52, %v1350_v49 }
 0xb92   : > { %2378 = vmatmul.msk.bf16.vlgmr.msrb.gmra.mxu1 %vm556_vm0, %v1356_v53 }
 0xc0f   : > { %v1382_v60 = vpop.f32.mrf.mxu1 }
 0xc10   : > { %v1383_v61 = vadd.f32 %v1382_v60, %v1357_v59  ;;  %v1506_v60 = vperm.slane %v3165_v56, 0 }
 0xc12   : > { %v1389_v63 = vmul.f32 0.044715, %v1383_v61  ;;  %v1387_v13 = vmul.f32 0.5, %v1383_v61 }
 0xc14   : > { %v1391_v0 = vmul.f32 %v1389_v63, %v1383_v61 }
 0xc16   : > { %v1393_v1 = vmul.f32 %v1391_v0, %v1383_v61 }
 0xc17   : > { %v1384_v2 = vpop.f32.mrf.mxu1 }
 0xc18   : > { %v1395_v3 = vadd.f32 %v1393_v1, %v1383_v61  ;;  %v1385_v4 = vadd.f32 %v1384_v2, %v1357_v59  ;;  %v1509_v1 = vperm.slane %v3165_v56, 1 }
 0xc1a   : > { %v1390_v6 = vmul.f32 0.044715, %v1385_v4  ;;  %v1397_v7 = vmul.f32 0.7978846, %v1395_v3  ;;  %v1388_v14 = vmul.f32 0.5, %v1385_v4 }
 0xc1c   : > { %v1392_v8 = vmul.f32 %v1390_v6, %v1385_v4  ;;  %2605 = vtanh.f32 %v1397_v7 }
 0xc1e   : > { %v1394_v9 = vmul.f32 %v1392_v8, %v1385_v4 }
 0xc20   : > { %v1396_v37 = vadd.f32 %v1394_v9, %v1385_v4 }
 0xc22   : > { %v1398_v11 = vmul.f32 0.7978846, %v1396_v37  ;;  %v2606_v50 = vpop.eup %2605  ;;  %v1518_v37 = vperm.slane %v3165_v56, 2 }
 0xc23   : > { %v1401_v41 = vadd.f32 1.0, %v2606_v50 }
 0xc24   : > { %2607 = vtanh.f32 %v1398_v11 }
 0xc25   : > { %v1403_v16 = vmul.f32 %v1401_v41, %v1387_v13 }
 0xc2a   : > { %v2608_v12 = vpop.eup %2607 }
 0xc2b   : > { %v1402_v15 = vadd.f32 1.0, %v2608_v12 }
 0xc2d   : > { %v1404_v54 = vmul.f32 %v1402_v15, %v1388_v14 }
 0xc2f   : > { %v1413_v17 = vpack.c.bf16 %v1404_v54, %v1403_v16 }
 0xc31   : > { %2395 = vmatmul.msk.bf16.vlgmr.msrb.gmra.mxu2 %vm687_vm2, %v1413_v17 }
 0xcb4   : > { %v1450_v19 = vpop.f32.mrf.mxu2 }
 0xcb5   : > { %v1455_v20 = vadd.f32 %v1450_v19, %v3097_v5 }
 0xcb7   : > { %v3139_v21 = vadd.f32 %v1457_v18, %v1455_v20 }
 0xcb9   : > { %v1462_v22 = vsel %vm556_vm0, %v3139_v21, 0.0 }
 0xcba   : > { %1463 = vadd.xlane.f32.xlu0 %v1462_v22 }
 0xcbc   : > { %v1452_v23 = vpop.f32.mrf.mxu2 }
 0xcbd   : > { %v1456_v24 = vadd.f32 %v1452_v23, %v3102_v10 }
 0xcbf   : > { %v3144_v25 = vadd.f32 %v1457_v18, %v1456_v24 }
 0xcc1   : > { %v1465_v26 = vsel %vm556_vm0, %v3144_v25, 0.0 }
 0xcc2   : > { %1466 = vadd.xlane.f32.xlu0 %v1465_v26 }
 0xd2d   : > { %v1464_v27 = vpop.xlane.xlu0 %1463 }
 0xd2e   : > { %v1468_v28 = vmul.f32 %v1464_v27, %v2991_v62 }
 0xd30   : > { %v1470_v5 = vsub.f32 %v3139_v21, %v1468_v28 }
 0xd32   : > { %v1472_v29 = vmul.f32 %v1470_v5, %v1470_v5 }
 0xd34   : > { %v1474_v30 = vsel %vm556_vm0, %v1472_v29, 0.0 }
 0xd35   : > { %1475 = vadd.xlane.f32.xlu2 %v1474_v30  ;;  %v1467_v31 = vpop.xlane.xlu0 %1466 }
 0xd36   : > { %v1469_v51 = vmul.f32 %v1467_v31, %v2991_v62 }
 0xd38   : > { %v1471_v10 = vsub.f32 %v3144_v25, %v1469_v51 }
 0xd3a   : > { %v1473_v32 = vmul.f32 %v1471_v10, %v1471_v10 }
 0xd3c   : > { %v1477_v33 = vsel %vm556_vm0, %v1473_v32, 0.0  ;;  %v2410_v32 = vld [vmem:[%s3352_s7 + $0x10] sm:$0xf] }
 0xd3d   : > { %1478 = vadd.xlane.f32.xlu1 %v1477_v33  ;;  %v1718_v33 = vsel %vm1079_vm10, %v2410_v32, 0 }
 0xda8   : > { %v1476_v35 = vpop.xlane.xlu2 %1475 }
 0xda9   : > { %v1480_v36 = vmul.f32 %v1476_v35, %v2991_v62 }
 0xdab   : > { %v1482_v39 = vadd.f32 1e-05, %v1480_v36 }
 0xdad   : > { %2609 = vrsqrt.f32 %v1482_v39  ;;  %vm1490_vm4 = vweird.f32 %v1482_v39 }
 0xdb0   : > { %v1479_v40 = vpop.xlane.xlu1 %1478 }
 0xdb1   : > { %v1481_v42 = vmul.f32 %v1479_v40, %v2991_v62 }
 0xdb3   : > { %v2610_v43 = vpop.eup %2609  ;;  %v1483_v44 = vadd.f32 1e-05, %v1481_v42 }
 0xdb4   : > { %v1485_v45 = vmul.f32 %v2610_v43, %v1482_v39  ;;  %vm1491_vm3 = vweird.f32 %v2610_v43 }
 0xdb5   : > { %2611 = vrsqrt.f32 %v1483_v44  ;;  %vm1492_vm5 = vmor %vm1490_vm4, %vm1491_vm3  ;;  %vm1500_vm7 = vweird.f32 %v1483_v44 }
 0xdb6   : > { %v1486_v46 = vmul.f32 %v2610_v43, %v1485_v45 }
 0xdb8   : > { %v1487_v47 = vmul.f32 0.5, %v1486_v46 }
 0xdba   : > { %v1488_v48 = vsub.f32 1.5, %v1487_v47 }
 0xdbb   : > { %v2612_v49 = vpop.eup %2611 }
 0xdbc   : > { %v1489_v52 = vmul.f32 %v2610_v43, %v1488_v48  ;;  %v1495_v53 = vmul.f32 %v2612_v49, %v1483_v44  ;;  %vm1501_vm6 = vweird.f32 %v2612_v49 }
 0xdbd   : > { %vm1502_vm11 = vmor %vm1500_vm7, %vm1501_vm6 }
 0xdbe   : > { %v1496_v55 = vmul.f32 %v2612_v49, %v1495_v53  ;;  %v1493_v57 = vsel %vm1492_vm5, %v2610_v43, %v1489_v52 }
 0xdbf   : > { %v1504_v61 = vmul.f32 %v1493_v57, %v1470_v5 }
 0xdc0   : > { %v1497_v58 = vmul.f32 0.5, %v1496_v55 }
 0xdc1   : > { %v1507_v2 = vmul.f32 %v1506_v60, %v1504_v61 }
 0xdc2   : > { %v1498_v59 = vsub.f32 1.5, %v1497_v58 }
 0xdc3   : > { %v1510_v6 = vadd.f32 %v1509_v1, %v1507_v2 }
 0xdc4   : > { %v1499_v63 = vmul.f32 %v2612_v49, %v1498_v59 }
 0xdc6   : > { %v1503_v0 = vsel %vm1502_vm11, %v2612_v49, %v1499_v63 }
 0xdc7   : > { %v1505_v3 = vmul.f32 %v1503_v0, %v1471_v10 }
 0xdc9   : > { %v1508_v4 = vmul.f32 %v1506_v60, %v1505_v3 }
 0xdcb   : > { %v1511_v7 = vadd.f32 %v1509_v1, %v1508_v4 }
 0xdcd   : > { %v1517_v8 = vpack.c.bf16 %v1511_v7, %v1510_v6 }
 0xdcf   : > { %2409 = vmatmul.msk.bf16.vlgmr.msrb.gmra.mxu3 %vm556_vm0, %v1517_v8 }
 0xe52   : > { %v1543_v9 = vpop.f32.mrf.mxu3 }
 0xe53   : > { %v1544_v11 = vadd.f32 %v1543_v9, %v1518_v37 }
 0xe55   : > { %v1548_v41 = vpack.c.bf16 %v1544_v11, %v1544_v11 }
 0xe57   : > { %v1557_v14 = vunpack.c.l.b16 %v1548_v41 }
 0xe5a   : > { %v1545_v50 = vpop.f32.mrf.mxu3 }
 0xe5b   : > { %v1546_v12 = vadd.f32 %v1545_v50, %v1518_v37 }
 0xe5d   : > { %v1549_v13 = vpack.c.bf16 %v1546_v12, %v1546_v12 }
 0xe5f   : > { %v1558_v15 = vunpack.c.l.b16 %v1549_v13 }
 0xe61   : > { %v3171_v16 = vpack.c.b16 %v1558_v15, %v1557_v14 }
 0xe63   : > { %1560 = vrot.lane.b32.xlu0 %v3171_v16, %s2725_s21  ;;  %s3384_s21 = smov 88  }
 0xe6b   : > { %1605 = vrot.lane.b32.xlu0 %v3171_v16, %s2726_s26  ;;  %s3385_s26 = smov 104  }
 0xe73   : > { %1736 = vrot.lane.b32.xlu0 %v3171_v16, %s3381_s18  ;;  %s3389_s18 = smov 48  }
 0xe7b   : > { %1826 = vrot.lane.b32.xlu0 %v3171_v16, %s3382_s22 }
 0xe83   : > { %1734 = vrot.lane.b32.xlu0 %v3171_v16, %s3383_s27 }
 0xed5   : > { %v1561_v54 = vpop.permute.xlu0 %1560 }
 0xed6   : > { %v1566_v17 = vsel %vm942_vm8, %v1561_v54, 0 }
 0xed7   : > { %1575 = vmatpush.bf16.xpose.msrb.mxu0 %v1566_v17 }
 0xedd   : > { %v1606_v18 = vpop.permute.xlu0 %1605 }
 0xede   : > { %2414 = vmatmul.msk.bf16.vlgmr.msrb.gmra.mxu0 %vm942_vm8, %v3171_v16  ;;  %1618 = vmatpush.bf16.msra.mxu1 %v1606_v18 }
 0xee2   : > { %1727 = vmatpush.bf16.msrb.mxu1 %v1718_v33 }
 0xee5   : > { %v1737_v35 = vpop.permute.xlu0 %1736 }
 0xee6   : > { %v1742_v40 = vsel %vm942_vm8, %v1737_v35, 0 }
 0xeed   : > { %v1827_v46 = vpop.permute.xlu0 %1826 }
 0xeee   : > { %v1832_v48 = vsel %vm942_vm8, %v1827_v46, 0 }
 0xef5   : > { %v1735_v52 = vpop.permute.xlu0 %1734 }
 0xf5b   : > { %v1577_v19 = vpop.f32.mrf.mxu0 }
 0xf5c   : > { %v1582_v20 = vsel %vm963_vm9, %v1577_v19, -inf }
 0xf5d   : > { %1583 = vmax.xlane.f32.xlu2 %v1582_v20 }
 0xf63   : > { %v1579_v22 = vpop.f32.mrf.mxu0 }
 0xf64   : > { %v1585_v23 = vsel %vm963_vm9, %v1579_v22, -inf }
 0xf65   : > { %1586 = vmax.xlane.f32.xlu1 %v1585_v23 }
 0xfd0   : > { %v1584_v24 = vpop.xlane.xlu2 %1583 }
 0xfd1   : > { %v1588_v26 = vsub.f32 %v1577_v19, %v1584_v24 }
 0xfd3   : > { %v1590_v27 = vmul.f32 1.442695, %v1588_v26 }
 0xfd5   : > { %2613 = vpow2.f32 %v1590_v27 }
 0xfd8   : > { %v1587_v28 = vpop.xlane.xlu1 %1586 }
 0xfd9   : > { %v1589_v5 = vsub.f32 %v1579_v22, %v1587_v28 }
 0xfdb   : > { %v2614_v29 = vpop.eup %2613  ;;  %v1592_v30 = vmul.f32 1.442695, %v1589_v5 }
 0xfdc   : > { %v1594_v31 = vsel %vm963_vm9, %v2614_v29, 0.0 }
 0xfdd   : > { %2615 = vpow2.f32 %v1592_v30  ;;  %1595 = vadd.xlane.f32.xlu2 %v1594_v31 }
 0xfe3   : > { %v2616_v51 = vpop.eup %2615 }
 0xfe4   : > { %v1597_v10 = vsel %vm963_vm9, %v2616_v51, 0.0 }
 0xfe5   : > { %1598 = vadd.xlane.f32.xlu1 %v1597_v10 }
 0xff5   : > { %1628 = vrot.lane.b32.xlu2 %v3171_v16, %s3384_s21 }
 0xffd   : > { %1824 = vrot.lane.b32.xlu2 %v3171_v16, %s3385_s26 }
 0xffe   : > { %1626 = vrot.lane.b32.xlu1 %v3171_v16, %s3386_s28  ;;  %s476_s28 = sand.u32 1, %s2712_s30  }
 0xfff   : > { %s2294_s15 = sshll.u32 %s476_s28, 4  ;;  %s2167_s26 = scalar_lea.sflag [#allocation3], %s476_s28 }
0x1000   : > { %s478_s22 = scalar_lea.vmem [#allocation2], %s2294_s15  ;;  %s2678_s15 = scalar_lea.hbm %s3358_s13, 32 }
0x1001   : > { %s2184_s27 = sshll.u32 %s478_s22, 4  ;;  %s2185_s27 = int_to_ptr.vmem [resolvable:$true] %s2184_s27 }
0x1050   : > { %v1596_v34 = vpop.xlane.xlu2 %1595 }
0x1051   : > { %2617 = vrcp.f32 %v1596_v34 }
0x1057   : > { %v2618_v42 = vpop.eup %2617 }
0x1058   : > { %v1629_v36 = vpop.permute.xlu2 %1628  ;;  %v1599_v38 = vpop.xlane.xlu1 %1598  ;;  %v1602_v44 = vmul.f32 %v2618_v42, %v2614_v29 }
0x1059   : > { %v1634_v39 = vsel %vm942_vm8, %v1629_v36, 0  ;;  %2619 = vrcp.f32 %v1599_v38 }
0x105a   : > { %1643 = vmatpush.bf16.xpose.msra.mxu2 %v1634_v39 }
0x105f   : > { %v2620_v43 = vpop.eup %2619 }
0x1060   : > { %v1603_v45 = vmul.f32 %v2620_v43, %v2616_v51  ;;  %v1825_v60 = vpop.permute.xlu2 %1824 }
0x1062   : > { %1751 = vmatpush.bf16.xpose.msrb.mxu2 %v1742_v40  ;;  %v1604_v47 = vpack.c.bf16 %v1603_v45, %v1602_v44 }
0x1064   : > { %2415 = vmatmul.msk.bf16.vlgmr.msra.gmra.mxu1 %vm963_vm9, %v1604_v47 }
0x1065   : > { %1841 = vmatpush.bf16.xpose.msra.mxu1 %v1832_v48 }
0x1070   : > { %v1627_v49 = vpop.permute.xlu1 %1626 }
0x1071   : > { %2416 = vmatmul.msk.bf16.vlgmr.msra.gmra.mxu2 %vm942_vm8, %v1627_v49  ;;  %v2411_v49 = vld [vmem:[%s3352_s7 + $0x14] sm:$0xf] }
0x1081   : > { %2420 = vmatmul.msk.bf16.vlgmr.msrb.gmra.mxu2 %vm942_vm8, %v1735_v52  ;;  %v1698_v52 = vsel %vm1079_vm10, %v2411_v49, 0  ;;  %v2496_v49 = vld [vmem:[%s3353_s8 + $0x10] sm:$0xff] }
0x1082   : > { %1707 = vmatpush.bf16.msra.mxu0 %v1698_v52 }
0x10e1   : > { %v1620_v53 = vpop.f32.mrf.mxu1 }
0x10e9   : > { %v1622_v55 = vpop.f32.mrf.mxu1 }
0x10ea   : > { %v1625_v57 = vpack.c.bf16 %v1622_v55, %v1620_v53 }
0x10ec   : > { %2419 = vmatmul.msk.bf16.vlgmr.msrb.gmra.mxu1 %vm942_vm8, %v1625_v57 }
0x10f4   : > { %v1645_v58 = vpop.f32.mrf.mxu2 }
0x10f5   : > { %v1650_v59 = vsel %vm963_vm9, %v1645_v58, -inf }
0x10f6   : > { %1651 = vmax.xlane.f32.xlu1 %v1650_v59 }
0x10fc   : > { %v1647_v61 = vpop.f32.mrf.mxu2  ;;  %2423 = vmatmul.msk.bf16.vlgmr.msra.gmra.mxu1 %vm942_vm8, %v1825_v60 }
0x10fd   : > { %v1653_v63 = vsel %vm963_vm9, %v1647_v61, -inf }
0x10fe   : > { %1654 = vmax.xlane.f32.xlu0 %v1653_v63 }
0x1104   : > { %v1753_v0 = vpop.f32.mrf.mxu2 }
0x1105   : > { %v1758_v1 = vsel %vm963_vm9, %v1753_v0, -inf }
0x1106   : > { %1759 = vmax.xlane.f32.xlu0 %v1758_v1 }
0x110c   : > { %v1755_v14 = vpop.f32.mrf.mxu2 }
0x110d   : > { %v1761_v18 = vsel %vm963_vm9, %v1755_v14, -inf }
0x1169   : > { %v3211_v2 = vpop.f32.mrf.mxu1  ;;  %v1652_v8 = vpop.xlane.xlu1 %1651 }
0x116a   : > { %v1656_v9 = vsub.f32 %v1645_v58, %v1652_v8 }
0x116c   : > { %v1658_v41 = vmul.f32 1.442695, %v1656_v9 }
0x1171   : > { %v3213_v3 = vpop.f32.mrf.mxu1  ;;  %v1655_v4 = vpop.xlane.xlu0 %1654 }
0x1172   : > { %v1657_v6 = vsub.f32 %v1647_v61, %v1655_v4 }
0x1174   : > { %v1660_v7 = vmul.f32 1.442695, %v1657_v6 }
0x1176   : > { %2621 = vpow2.f32 %v1660_v7 }
0x1177   : > { %2623 = vpow2.f32 %v1658_v41 }
0x1179   : > { %v1843_v37 = vpop.f32.mrf.mxu1  ;;  %v1760_v13 = vpop.xlane.xlu0 %1759 }
0x117a   : > { %v1848_v11 = vsel %vm963_vm9, %v1843_v37, -inf  ;;  %v1764_v15 = vsub.f32 %v1753_v0, %v1760_v13 }
0x117b   : > { %1849 = vmax.xlane.f32.xlu2 %v1848_v11 }
0x117c   : > { %v2622_v50 = vpop.eup %2621  ;;  %v1766_v19 = vmul.f32 1.442695, %v1764_v15 }
0x117d   : > { %v1665_v12 = vsel %vm963_vm9, %v2622_v50, 0.0  ;;  %v2624_v20 = vpop.eup %2623 }
0x117e   : > { %1666 = vadd.xlane.f32.xlu0 %v1665_v12  ;;  %2625 = vpow2.f32 %v1766_v19  ;;  %v1662_v22 = vsel %vm963_vm9, %v2624_v20, 0.0  ;;  %v2412_v12 = vld [vmem:[%s3352_s7 + $0x18] sm:$0xf] }
0x117f   : > { %v1806_v13 = vsel %vm1079_vm10, %v2412_v12, 0 }
0x1180   : > { %1815 = vmatpush.bf16.msrb.mxu0 %v1806_v13 }
0x1181   : > { %v1845_v54 = vpop.f32.mrf.mxu1 }
0x1182   : > { %v1851_v17 = vsel %vm963_vm9, %v1845_v54, -inf }
0x1183   : > { %1852 = vmax.xlane.f32.xlu1 %v1851_v17  ;;  %1762 = vmax.xlane.f32.xlu2 %v1761_v18 }
0x1184   : > { %v2626_v23 = vpop.eup %2625 }
0x1185   : > { %v1770_v24 = vsel %vm963_vm9, %v2626_v23, 0.0 }
0x118b   : > { %1663 = vadd.xlane.f32.xlu1 %v1662_v22 }
0x1193   : > { %1771 = vadd.xlane.f32.xlu1 %v1770_v24 }
0x119b   : > { %1673 = vrot.lane.b32.xlu2 %v3171_v16, %s3387_s25 }
0x11ee   : > { %v1850_v26 = vpop.xlane.xlu2 %1849 }
0x11ef   : > { %v1854_v27 = vsub.f32 %v1843_v37, %v1850_v26 }
0x11f1   : > { %v1856_v28 = vmul.f32 1.442695, %v1854_v27  ;;  %v1667_v10 = vpop.xlane.xlu0 %1666 }
0x11f3   : > { %2627 = vpow2.f32 %v1856_v28 }
0x11f6   : > { %v1853_v5 = vpop.xlane.xlu1 %1852  ;;  %v1763_v29 = vpop.xlane.xlu2 %1762 }
0x11f7   : > { %v1765_v30 = vsub.f32 %v1755_v14, %v1763_v29  ;;  %v1855_v32 = vsub.f32 %v1845_v54, %v1853_v5  ;;  %v1916_v5 = vperm.slane %v3165_v56, 3 }
0x11f9   : > { %v2628_v31 = vpop.eup %2627  ;;  %v1768_v51 = vmul.f32 1.442695, %v1765_v30  ;;  %v1858_v34 = vmul.f32 1.442695, %v1855_v32 }
0x11fa   : > { %v1860_v33 = vsel %vm963_vm9, %v2628_v31, 0.0 }
0x11fb   : > { %1861 = vadd.xlane.f32.xlu1 %v1860_v33  ;;  %2629 = vpow2.f32 %v1768_v51 }
0x11fc   : > { %2631 = vrcp.f32 %v1667_v10 }
0x11fe   : > { %v1664_v35 = vpop.xlane.xlu1 %1663  ;;  %v1674_v36 = vpop.permute.xlu2 %1673 }
0x11ff   : > { %2633 = vrcp.f32 %v1664_v35  ;;  %1686 = vmatpush.bf16.msra.mxu3 %v1674_v36 }
0x1200   : > { %2635 = vpow2.f32 %v1858_v34 }
0x1201   : > { %v2630_v38 = vpop.eup %2629 }
0x1202   : > { %v2632_v39 = vpop.eup %2631  ;;  %v1773_v40 = vsel %vm963_vm9, %v2630_v38, 0.0 }
0x1203   : > { %1774 = vadd.xlane.f32.xlu0 %v1773_v40  ;;  %v1671_v43 = vmul.f32 %v2632_v39, %v2622_v50  ;;  %v2413_v50 = vld [vmem:[%s3352_s7 + $0x1c] sm:$0xf] }
0x1204   : > { %v1896_v41 = vsel %vm1079_vm10, %v2413_v50, 0 }
0x1205   : > { %v2634_v42 = vpop.eup %2633 }
0x1206   : > { %v1670_v44 = vmul.f32 %v2634_v42, %v2624_v20  ;;  %v2636_v45 = vpop.eup %2635  ;;  %v1772_v48 = vpop.xlane.xlu1 %1771 }
0x1207   : > { %v1863_v47 = vsel %vm963_vm9, %v2636_v45, 0.0 }
0x1208   : > { %v1672_v46 = vpack.c.bf16 %v1671_v43, %v1670_v44 }
0x120a   : > { %2417 = vmatmul.msk.bf16.vlgmr.msra.gmra.mxu3 %vm963_vm9, %v1672_v46  ;;  %v2497_v46 = vld [vmem:[%s3353_s8 + $0x18] sm:$0xff] }
0x120b   : > { %1864 = vadd.xlane.f32.xlu0 %v1863_v47 }
0x1214   : > { %1871 = vrot.lane.b32.xlu1 %v3171_v16, %s3388_s19 }
0x121f   : > { %1781 = vrot.lane.b32.xlu0 %v3171_v16, %s3389_s18  ;;  %s2183_s18 = scalar_lea.hbm %s3358_s13, %s2504_s20 }
0x1220   : > { %s2186_s21 = sshll.u32 %s2183_s18, 4  ;;  %s2187_s21 = int_to_ptr.hbm [resolvable:$true] %s2186_s21 }
0x1221   : > { %s2672_s0 = sshra.s32 %s2187_s21, 4  ;;  %s2673_s0 = int_to_ptr.hbm [resolvable:$true] %s2672_s0 }
0x1222   : > { %s2674_s17 = scalar_lea.hbm %s2673_s0, 16  ;;  %p2679_p0 = scmp.lt.s32.totalorder %s2673_s0, %s3358_s13 }
0x1223   : > { %p2675_p11 = scmp.ne.s32.totalorder %s2673_s0, %s2674_s17  ;;  %p2680_p1 = scmp.lt.s32.totalorder %s2678_s15, %s2674_s17 }
0x1225   : > { %p2676_p12 = pnand %p2675_p11, %p2851_p5  ;;  %p2681_p2 = por %p2680_p1, %p2679_p0 }
0x1227   : > { %p2677_p13 = pneg %p2676_p12 }
0x1229   : > { %p2682_p3 = pnand %p2681_p2, %p2677_p13 }
0x126e   : > { %v1862_v55 = vpop.xlane.xlu1 %1861 }
0x126f   : > { %2637 = vrcp.f32 %v1862_v55 }
0x1275   : > { %v2638_v58 = vpop.eup %2637 }
0x1276   : > { %v1775_v53 = vpop.xlane.xlu0 %1774  ;;  %v1868_v61 = vmul.f32 %v2638_v58, %v2628_v31 }
0x127e   : > { %v1865_v57 = vpop.xlane.xlu0 %1864 }
0x127f   : > { %2639 = vrcp.f32 %v1865_v57 }
0x1280   : > { %2641 = vrcp.f32 %v1775_v53 }
0x1281   : > { %2643 = vrcp.f32 %v1772_v48 }
0x1285   : > { %v2640_v59 = vpop.eup %2639 }
0x1286   : > { %v1872_v60 = vpop.permute.xlu1 %1871  ;;  %v1869_v63 = vmul.f32 %v2640_v59, %v2636_v45  ;;  %v2642_v0 = vpop.eup %2641 }
0x1287   : > { %1884 = vmatpush.bf16.msra.mxu2 %v1872_v60  ;;  %v2644_v4 = vpop.eup %2643  ;;  %v1779_v6 = vmul.f32 %v2642_v0, %v2630_v38 }
0x1288   : > { %v1870_v16 = vpack.c.bf16 %v1869_v63, %v1868_v61  ;;  %v1778_v7 = vmul.f32 %v2644_v4, %v2626_v23 }
0x128a   : > { %2424 = vmatmul.msk.bf16.vlgmr.msra.gmra.mxu2 %vm963_vm9, %v1870_v16  ;;  %v1780_v9 = vpack.c.bf16 %v1779_v6, %v1778_v7 }
0x128d   : > { %v1688_v1 = vpop.f32.mrf.mxu3 }
0x1291   : > { %v1782_v8 = vpop.permute.xlu0 %1781 }
0x1292   : > { %1794 = vmatpush.bf16.msrb.mxu3 %v1782_v8 }
0x1295   : > { %v1690_v37 = vpop.f32.mrf.mxu3  ;;  %2421 = vmatmul.msk.bf16.vlgmr.msrb.gmra.mxu3 %vm963_vm9, %v1780_v9  ;;  %v1963_v9 = vperm.slane %v3165_v56, 4 }
0x1296   : > { %v1693_v11 = vpack.c.bf16 %v1690_v37, %v1688_v1  ;;  %1905 = vmatpush.bf16.msra.mxu3 %v1896_v41  ;;  %v1966_v41 = vperm.slane %v3165_v56, 5 }
0x1298   : > { %2418 = vmatmul.msk.bf16.vlgmr.msra.gmra.mxu0 %vm942_vm8, %v1693_v11 }
0x1299   : > { %1997 = vmatpush.bf16.msra.mxu0 %v2497_v46 }
0x129d   : > { %1998 = vmatpush.bf16.msra.mxu0 %v2496_v49 }
0x130d   : > { %v1886_v14 = vpop.f32.mrf.mxu2 }
0x1315   : > { %v1888_v15 = vpop.f32.mrf.mxu2  ;;  %v1709_v20 = vpop.f32.mrf.mxu0 }
0x1316   : > { %v1891_v54 = vpack.c.bf16 %v1888_v15, %v1886_v14  ;;  %v1730_v23 = vadd.f32 %v3211_v2, %v1709_v20  ;;  %v2499_v20 = vld [vmem:[%s3354_s9 + $0x28] sm:$0xff] }
0x1318   : > { %v1796_v17 = vpop.f32.mrf.mxu3  ;;  %2425 = vmatmul.msk.bf16.vlgmr.msra.gmra.mxu3 %vm942_vm8, %v1891_v54 }
0x131d   : > { %v1711_v22 = vpop.f32.mrf.mxu0 }
0x131e   : > { %v1732_v30 = vadd.f32 %v3213_v3, %v1711_v22  ;;  %v2498_v22 = vld [vmem:[%s3354_s9 + $0x20] sm:$0xff] }
0x1320   : > { %v1798_v18 = vpop.f32.mrf.mxu3 }
0x1321   : > { %v1801_v19 = vpack.c.bf16 %v1798_v18, %v1796_v17  ;;  %v2501_v18 = vld [vmem:[%s3354_s9 + $0x38] sm:$0xff] }
0x1322   : > { %2064 = vmatpush.bf16.msrb.mxu1 %v2501_v18 }
0x1323   : > { %2422 = vmatmul.msk.bf16.vlgmr.msrb.gmra.mxu0 %vm942_vm8, %v1801_v19  ;;  %v2500_v19 = vld [vmem:[%s3354_s9 + $0x30] sm:$0xff] }
0x1326   : > { %2065 = vmatpush.bf16.msrb.mxu1 %v2500_v19 }
0x132a   : > { %2066 = vmatpush.bf16.msrb.mxu1 %v2499_v20 }
0x132e   : > { %2067 = vmatpush.bf16.msrb.mxu1 %v2498_v22 }
0x139b   : > { %v1907_v24 = vpop.f32.mrf.mxu3 }
0x13a0   : > { %v1817_v26 = vpop.f32.mrf.mxu0 }
0x13a1   : > { %v1822_v27 = vadd.f32 %v1817_v26, %v1730_v23  ;;  %v1975_v23 = vperm.slane %v3165_v56, 6 }
0x13a3   : > { %v1912_v28 = vadd.f32 %v1907_v24, %v1822_v27  ;;  %v1909_v33 = vpop.f32.mrf.mxu3 }
0x13a5   : > { %v1914_v29 = vadd.f32 %v1912_v28, %v3139_v21 }
0x13a7   : > { %v3252_v31 = vadd.f32 %v1916_v5, %v1914_v29 }
0x13a8   : > { %v1819_v51 = vpop.f32.mrf.mxu0 }
0x13a9   : > { %v1823_v10 = vadd.f32 %v1819_v51, %v1732_v30  ;;  %v1919_v32 = vsel %vm556_vm0, %v3252_v31, 0.0 }
0x13aa   : > { %1920 = vadd.xlane.f32.xlu2 %v1919_v32 }
0x13ab   : > { %v1913_v2 = vadd.f32 %v1909_v33, %v1823_v10 }
0x13ad   : > { %v1915_v34 = vadd.f32 %v1913_v2, %v3144_v25 }
0x13af   : > { %v3257_v35 = vadd.f32 %v1916_v5, %v1915_v34 }
0x13b1   : > { %v1922_v36 = vsel %vm556_vm0, %v3257_v35, 0.0 }
0x13b2   : > { %1923 = vadd.xlane.f32.xlu0 %v1922_v36 }
0x141d   : > { %v1921_v21 = vpop.xlane.xlu2 %1920 }
0x141e   : > { %v1925_v3 = vmul.f32 %v1921_v21, %v2991_v62 }
0x1420   : > { %v1927_v38 = vsub.f32 %v3252_v31, %v1925_v3 }
0x1422   : > { %v1929_v39 = vmul.f32 %v1927_v38, %v1927_v38 }
0x1424   : > { %v1931_v40 = vsel %vm556_vm0, %v1929_v39, 0.0 }
0x1425   : > { %1932 = vadd.xlane.f32.xlu1 %v1931_v40  ;;  %v1924_v42 = vpop.xlane.xlu0 %1923 }
0x1426   : > { %v1926_v43 = vmul.f32 %v1924_v42, %v2991_v62 }
0x1428   : > { %v1928_v25 = vsub.f32 %v3257_v35, %v1926_v43 }
0x142a   : > { %v1930_v44 = vmul.f32 %v1928_v25, %v1928_v25 }
0x142c   : > { %v1934_v45 = vsel %vm556_vm0, %v1930_v44, 0.0 }
0x142d   : > { %1935 = vadd.xlane.f32.xlu2 %v1934_v45  ;;  %v2076_v45 = vperm.slane %v3165_v56, 7 }
0x1498   : > { %v1933_v47 = vpop.xlane.xlu1 %1932 }
0x1499   : > { %v1937_v48 = vmul.f32 %v1933_v47, %v2991_v62 }
0x149b   : > { %v1939_v52 = vadd.f32 1e-05, %v1937_v48 }
0x149d   : > { %2645 = vrsqrt.f32 %v1939_v52  ;;  %vm1947_vm9 = vweird.f32 %v1939_v52 }
0x14a0   : > { %v1936_v53 = vpop.xlane.xlu2 %1935 }
0x14a1   : > { %v1938_v55 = vmul.f32 %v1936_v53, %v2991_v62 }
0x14a3   : > { %v2646_v57 = vpop.eup %2645  ;;  %v1940_v58 = vadd.f32 1e-05, %v1938_v55 }
0x14a4   : > { %v1942_v59 = vmul.f32 %v2646_v57, %v1939_v52  ;;  %vm1948_vm8 = vweird.f32 %v2646_v57 }
0x14a5   : > { %2647 = vrsqrt.f32 %v1940_v58  ;;  %vm1949_vm10 = vmor %vm1947_vm9, %vm1948_vm8  ;;  %vm1957_vm13 = vweird.f32 %v1940_v58 }
0x14a6   : > { %v1943_v60 = vmul.f32 %v2646_v57, %v1942_v59 }
0x14a8   : > { %v1944_v61 = vmul.f32 0.5, %v1943_v60 }
0x14aa   : > { %v1945_v63 = vsub.f32 1.5, %v1944_v61 }
0x14ab   : > { %v2648_v16 = vpop.eup %2647 }
0x14ac   : > { %v1946_v0 = vmul.f32 %v2646_v57, %v1945_v63  ;;  %v1952_v1 = vmul.f32 %v2648_v16, %v1940_v58  ;;  %vm1958_vm12 = vweird.f32 %v2648_v16 }
0x14ad   : > { %vm1959_vm14 = vmor %vm1957_vm13, %vm1958_vm12 }
0x14ae   : > { %v1953_v4 = vmul.f32 %v2648_v16, %v1952_v1  ;;  %v1950_v6 = vsel %vm1949_vm10, %v2646_v57, %v1946_v0 }
0x14af   : > { %v1961_v37 = vmul.f32 %v1950_v6, %v1927_v38 }
0x14b0   : > { %v1954_v7 = vmul.f32 0.5, %v1953_v4 }
0x14b1   : > { %v1964_v12 = vmul.f32 %v1963_v9, %v1961_v37 }
0x14b2   : > { %v1955_v8 = vsub.f32 1.5, %v1954_v7  ;;  %v2502_v7 = vld [vmem:[%s3355_s10] sm:$0xff] }
0x14b3   : > { %v1967_v15 = vadd.f32 %v1966_v41, %v1964_v12 }
0x14b4   : > { %v1956_v11 = vmul.f32 %v2648_v16, %v1955_v8 }
0x14b6   : > { %v1960_v50 = vsel %vm1959_vm14, %v2648_v16, %v1956_v11 }
0x14b7   : > { %v1962_v13 = vmul.f32 %v1960_v50, %v1928_v25 }
0x14b9   : > { %v1965_v14 = vmul.f32 %v1963_v9, %v1962_v13 }
0x14bb   : > { %v1968_v54 = vadd.f32 %v1966_v41, %v1965_v14 }
0x14bd   : > { %v1974_v17 = vpack.c.bf16 %v1968_v54, %v1967_v15 }
0x14bf   : > { %2438 = vmatmul.msk.bf16.vlgmr.msra.gmra.mxu0 %vm556_vm0, %v1974_v17 }
0x153c   : > { %v2000_v24 = vpop.f32.mrf.mxu0 }
0x153d   : > { %v2001_v26 = vadd.f32 %v2000_v24, %v1975_v23 }
0x153f   : > { %v2007_v27 = vmul.f32 0.044715, %v2001_v26  ;;  %v2005_v39 = vmul.f32 0.5, %v2001_v26 }
0x1541   : > { %v2009_v28 = vmul.f32 %v2007_v27, %v2001_v26 }
0x1543   : > { %v2011_v5 = vmul.f32 %v2009_v28, %v2001_v26 }
0x1544   : > { %v2002_v29 = vpop.f32.mrf.mxu0 }
0x1545   : > { %v2013_v30 = vadd.f32 %v2011_v5, %v2001_v26  ;;  %v2003_v51 = vadd.f32 %v2002_v29, %v1975_v23 }
0x1547   : > { %v2008_v10 = vmul.f32 0.044715, %v2003_v51  ;;  %v2015_v32 = vmul.f32 0.7978846, %v2013_v30  ;;  %v2006_v40 = vmul.f32 0.5, %v2003_v51 }
0x1549   : > { %v2010_v33 = vmul.f32 %v2008_v10, %v2003_v51  ;;  %2649 = vtanh.f32 %v2015_v32 }
0x154b   : > { %v2012_v2 = vmul.f32 %v2010_v33, %v2003_v51 }
0x154d   : > { %v2014_v34 = vadd.f32 %v2012_v2, %v2003_v51 }
0x154f   : > { %v2016_v36 = vmul.f32 0.7978846, %v2014_v34  ;;  %v2650_v21 = vpop.eup %2649 }
0x1550   : > { %v2019_v3 = vadd.f32 1.0, %v2650_v21 }
0x1551   : > { %2651 = vtanh.f32 %v2016_v36 }
0x1552   : > { %v2021_v43 = vmul.f32 %v2019_v3, %v2005_v39 }
0x1557   : > { %v2652_v38 = vpop.eup %2651 }
0x1558   : > { %v2020_v42 = vadd.f32 1.0, %v2652_v38 }
0x155a   : > { %v2022_v25 = vmul.f32 %v2020_v42, %v2006_v40 }
0x155c   : > { %v2032_v44 = vpack.c.bf16 %v2022_v25, %v2021_v43 }
0x155e   : > { %2463 = vmatmul.msk.bf16.vlgmr.msrb.gmra.mxu1 %vm687_vm2, %v2032_v44 }
0x15db   : > { %v2069_v46 = vpop.f32.mrf.mxu1 }
0x15dc   : > { %v2074_v47 = vadd.f32 %v2069_v46, %v3252_v31 }
0x15de   : > { %v2077_v48 = vadd.f32 %v2076_v45, %v2074_v47 }
0x15e0   : > { %v2079_v49 = vsel %vm556_vm0, %v2077_v48, 0.0 }
0x15e1   : > { %2080 = vadd.xlane.f32.xlu2 %v2079_v49 }
0x15e3   : > { %v2071_v52 = vpop.f32.mrf.mxu1 }
0x15e4   : > { %v2075_v53 = vadd.f32 %v2071_v52, %v3257_v35  ;;  %v2503_v35 = vld [vmem:[%s3355_s10 + $0x8] sm:$0xff] }
0x15e5   : > { %2156 = vmatpush.bf16.msrb.mxu2 %v2503_v35 }
0x15e6   : > { %v2078_v55 = vadd.f32 %v2076_v45, %v2075_v53 }
0x15e8   : > { %v2082_v57 = vsel %vm556_vm0, %v2078_v55, 0.0 }
0x15e9   : > { %2083 = vadd.xlane.f32.xlu2 %v2082_v57  ;;  %2157 = vmatpush.bf16.msrb.mxu2 %v2502_v7 }
0x1654   : > { %v2081_v58 = vpop.xlane.xlu2 %2080 }
0x1655   : > { %v2085_v59 = vmul.f32 %v2081_v58, %v2991_v62 }
0x1657   : > { %v2087_v60 = vsub.f32 %v2077_v48, %v2085_v59 }
0x1659   : > { %v2089_v61 = vmul.f32 %v2087_v60, %v2087_v60 }
0x165b   : > { %v2091_v56 = vsel %vm556_vm0, %v2089_v61, 0.0 }
0x165c   : > { %2092 = vadd.xlane.f32.xlu0 %v2091_v56  ;;  %v2084_v31 = vpop.xlane.xlu2 %2083 }
0x165d   : > { %v2086_v63 = vmul.f32 %v2084_v31, %v2991_v62 }
0x165f   : > { %v2088_v16 = vsub.f32 %v2078_v55, %v2086_v63 }
0x1661   : > { %v2090_v0 = vmul.f32 %v2088_v16, %v2088_v16 }
0x1663   : > { %v2094_v1 = vsel %vm556_vm0, %v2090_v0, 0.0 }
0x1664   : > { %2095 = vadd.xlane.f32.xlu1 %v2094_v1 }
0x16cf   : > { %v2093_v4 = vpop.xlane.xlu0 %2092 }
0x16d0   : > { %v2097_v6 = vmul.f32 %v2093_v4, %v2991_v62 }
0x16d2   : > { %v2099_v8 = vadd.f32 1e-05, %v2097_v6 }
0x16d4   : > { %2653 = vrsqrt.f32 %v2099_v8  ;;  %vm2107_vm15 = vweird.f32 %v2099_v8 }
0x16d7   : > { %v2096_v9 = vpop.xlane.xlu1 %2095 }
0x16d8   : > { %v2098_v37 = vmul.f32 %v2096_v9, %v2991_v62  ;;  %v2657_v62 = vld [vmem:[%s3357_s12] sm:$0xf] }
0x16d9   : > { %v2123_v23 = vperm.slane %v2657_v62, 1  ;;  %v2126_v28 = vperm.slane %v2657_v62, 2  ;;  %v2134_v33 = vperm.slane %v2657_v62, 3 }
0x16da   : > { %v2654_v11 = vpop.eup %2653  ;;  %v2100_v50 = vadd.f32 1e-05, %v2098_v37 }
0x16db   : > { %v2102_v41 = vmul.f32 %v2654_v11, %v2099_v8  ;;  %vm2108_vm2 = vweird.f32 %v2654_v11 }
0x16dc   : > { %2655 = vrsqrt.f32 %v2100_v50  ;;  %vm2109_vm1 = vmor %vm2107_vm15, %vm2108_vm2  ;;  %vm2117_vm4 = vweird.f32 %v2100_v50 }
0x16dd   : > { %v2103_v12 = vmul.f32 %v2654_v11, %v2102_v41 }
0x16df   : > { %v2104_v13 = vmul.f32 0.5, %v2103_v12 }
0x16e1   : > { %v2105_v14 = vsub.f32 1.5, %v2104_v13 }
0x16e2   : > { %v2656_v15 = vpop.eup %2655 }
0x16e3   : > { %v2106_v54 = vmul.f32 %v2654_v11, %v2105_v14  ;;  %v2112_v17 = vmul.f32 %v2656_v15, %v2100_v50  ;;  %vm2118_vm3 = vweird.f32 %v2656_v15 }
0x16e4   : > { %vm2119_vm5 = vmor %vm2117_vm4, %vm2118_vm3 }
0x16e5   : > { %v2113_v18 = vmul.f32 %v2656_v15, %v2112_v17  ;;  %v2110_v19 = vsel %vm2109_vm1, %v2654_v11, %v2106_v54 }
0x16e6   : > { %v2121_v24 = vmul.f32 %v2110_v19, %v2087_v60 }
0x16e7   : > { %v2114_v20 = vmul.f32 0.5, %v2113_v18 }
0x16e8   : > { %v2124_v5 = vmul.f32 %v2123_v23, %v2121_v24 }
0x16e9   : > { %v2115_v22 = vsub.f32 1.5, %v2114_v20 }
0x16ea   : > { %v2127_v51 = vadd.f32 %v2126_v28, %v2124_v5 }
0x16eb   : > { %v2116_v26 = vmul.f32 %v2656_v15, %v2115_v22 }
0x16ed   : > { %v2120_v27 = vsel %vm2119_vm5, %v2656_v15, %v2116_v26 }
0x16ee   : > { %v2122_v29 = vmul.f32 %v2120_v27, %v2088_v16 }
0x16f0   : > { %v2125_v30 = vmul.f32 %v2123_v23, %v2122_v29 }
0x16f2   : > { %v2128_v10 = vadd.f32 %v2126_v28, %v2125_v30 }
0x16f4   : > { %v2133_v32 = vpack.c.bf16 %v2128_v10, %v2127_v51 }
0x16f6   : > { %2472 = vmatmul.msk.bf16.vlgmr.msrb.gmra.mxu2 %vm556_vm0, %v2133_v32 }
0x1779   : > { %v2159_v2 = vpop.f32.mrf.mxu2 }
0x177a   : > { %v2160_v34 = vadd.f32 %v2159_v2, %v2134_v33 }
0x177c   : > { %2164 = vst [vmem:[%s478_s22] sm:$0xff] %v2160_v34 }
0x1781   : > { %v2161_v36 = vpop.f32.mrf.mxu2 }
0x1782   : > { %v2162_v21 = vadd.f32 %v2161_v36, %v2134_v33 }
0x1784   : > { %2165 = vst [vmem:[%s478_s22 + $0x8] sm:$0xff] %v2162_v21 }
0x1785   : > { %2685 = shalt.err (!%p2682_p3)
}
0x1786   : > { %s2736_s28 = smov 128   ;;  %s2737_s18 = smov 8  }
0x1787   : > { %2505 = dma.vmem_to_hbm [thread:$0]  (%p2851_p5), %s2185_s27, 256, %s2187_s21, %s2167_s26, %s2736_s28, %s2736_s28, %s2737_s18  }
0x1788 PF: > { %p2511_p4 = scmp.ge.s32.totalorder %s2720_s16, 2  ;;  %s2205_s22 = sand.u32 1, %s2708_s29  }
0x1789   : > { %s2206_s1 = scalar_lea.sflag [#allocation3], %s2205_s22 }
0x178a   : > { %p2508_p7 = pnand %p2511_p4, %p2855_p6 }
0x178c   : > { %p2509_p8 = pneg %p2508_p7 }
0x178e   : > { %2703 = dma.done.wait (%p2509_p8), %s2206_s1, 256  }
0x178f   : > { %2705 = vsyncadd (%p2509_p8), %s2206_s1, 4294967040  ;;  %s3390_s16 = sld [smem:[#allocation6_spill]]  ;;  %s3393_s29 = smov %s2712_s30 }
0x1790   : > { %s3391_s0 = sld [smem:[#allocation5_spill]] }
0x1791   : > { %s3392_s15 = sld [smem:[#allocation7_spill]] }
0x1795   : > { %p25_p9 = scmp.ge.s32.totalorder %s3390_s16, 4  }
0x1796   : > { %s3394_s30 = smov %s3391_s0 }
0x1797   :  { %27 = sbr.rel (!%p25_p9) target bundleno = 6 (0x6), region = 127 }
0x179c   :  { %2220 = vsyncpa [#allocation3], 1 }
0x179d   :  { %2222 = vsyncpa [#allocation3 + $0x1], 1 }

</bundles_post_ra>
